<compile_context>
chip_gen: v6e
topology: v6e:2x2x1
jax: 0.10.0
libtpu: 0.0.40
codegen_flags: <defaults>
</compile_context>

<pallas_src>
import jax
import jax.numpy as jnp
from jax import lax
from jax.experimental import pallas as pl
from jax.experimental.pallas import tpu as pltpu


# ----------------------------------------------------------------------------
# Pallas kernel
# ----------------------------------------------------------------------------
def bigru_kernel(x_ref,
                 wih_f_ref, whh_f_ref, bih_f_ref, bhh_f_ref,
                 wih_b_ref, whh_b_ref, bih_b_ref, bhh_b_ref,
                 out_f_ref, out_b_ref,
                 gi_f_scr, gi_b_scr):
    T, TB, D = x_ref.shape
    H = whh_f_ref.shape[0]
    G = 3 * H

    # ---- hoisted loads / broadcasts (once per grid step, outside the loop) ----
    wih_f = wih_f_ref[...]
    whh_f = whh_f_ref[...]
    wih_b = wih_b_ref[...]
    whh_b = whh_b_ref[...]
    bih_f = bih_f_ref[...]                                   # (1, G)
    bih_b = bih_b_ref[...]
    bhh_f = jnp.broadcast_to(bhh_f_ref[...], (TB, G))        # materialize once
    bhh_b = jnp.broadcast_to(bhh_b_ref[...], (TB, G))

    # ---- input projection for ALL timesteps: one big matmul per direction ----
    x_flat = x_ref[...].reshape(T * TB, D)                   # sublane-aligned merge
    gi_f_scr[...] = (jnp.dot(x_flat, wih_f, preferred_element_type=jnp.float32)
                     + bih_f).reshape(T, TB, G)
    gi_b_scr[...] = (jnp.dot(x_flat, wih_b, preferred_element_type=jnp.float32)
                     + bih_b).reshape(T, TB, G)

    # ---- recurrence: forward & backward interleaved in one loop ----
    def gates(gi, gh, h_prev):
        r = jax.nn.sigmoid(gi[:, 0:H] + gh[:, 0:H])
        z = jax.nn.sigmoid(gi[:, H:2 * H] + gh[:, H:2 * H])
        n = jnp.tanh(gi[:, 2 * H:] + r * gh[:, 2 * H:])
        return (1.0 - z) * n + z * h_prev

    def step(i, carry):
        h_f, h_b = carry
        tf = i
        tb = T - 1 - i
        gh_f = jnp.dot(h_f, whh_f, preferred_element_type=jnp.float32) + bhh_f
        gh_b = jnp.dot(h_b, whh_b, preferred_element_type=jnp.float32) + bhh_b
        h_f = gates(gi_f_scr[tf], gh_f, h_f)
        h_b = gates(gi_b_scr[tb], gh_b, h_b)
        out_f_ref[tf] = h_f.astype(out_f_ref.dtype)          # lane-dense stores
        out_b_ref[tb] = h_b.astype(out_b_ref.dtype)
        return (h_f, h_b)

    h0 = jnp.zeros((TB, H), jnp.float32)
    lax.fori_loop(0, T, step, (h0, h0),
                  unroll=True if T <= 16 else 4)


# ----------------------------------------------------------------------------
# Wrapper
# ----------------------------------------------------------------------------
def gru_block_forward(x, params, batch_tile=None):
    """x: (B, T, D) float32, batch_first like PyTorch. Returns (B, T, 2H)."""
    B, T, D = x.shape
    H = params["whh_f"].shape[1]                  # PyTorch layout (3H, H)
    G = 3 * H

    # Pad batch to a multiple of 8 (sublane) so batch tiling and the in-kernel
    # (T, TB, D) -> (T*TB, D) merge stay aligned.
    B_pad = ((B + 7) // 8) * 8
    x_tm = jnp.transpose(x, (1, 0, 2))            # time-major (T, B, D)
    if B_pad != B:
        x_tm = jnp.pad(x_tm, ((0, 0), (0, B_pad - B), (0, 0)))

    if batch_tile is None:
        batch_tile = min(B_pad, 128)              # multiple of 8; bounds VMEM per step
    TB = batch_tile
    grid = (pl.cdiv(B_pad, TB),)

    # Pre-transpose weights so in-kernel matmuls are plain row-major MXU dots.
    wih_f = params["wih_f"].T                     # (D, 3H)
    whh_f = params["whh_f"].T                     # (H, 3H)
    wih_b = params["wih_b"].T
    whh_b = params["whh_b"].T
    bih_f = params["bih_f"].reshape(1, G)
    bhh_f = params["bhh_f"].reshape(1, G)
    bih_b = params["bih_b"].reshape(1, G)
    bhh_b = params["bhh_b"].reshape(1, G)

    def rep(shape):   # replicated block (weights / biases) — same tile every step
        return pl.BlockSpec(shape, lambda i: (0, 0))

    out_f, out_b = pl.pallas_call(
        bigru_kernel,
        out_shape=(jax.ShapeDtypeStruct((T, B_pad, H), x.dtype),
                   jax.ShapeDtypeStruct((T, B_pad, H), x.dtype)),
        grid_spec=pltpu.PrefetchScalarGridSpec(
            num_scalar_prefetch=0,
            grid=grid,
            in_specs=[
                pl.BlockSpec((T, TB, D), lambda i: (0, i, 0)),     # x (batch tiled)
                rep((D, G)), rep((H, G)), rep((1, G)), rep((1, G)),  # forward weights
                rep((D, G)), rep((H, G)), rep((1, G)), rep((1, G)),  # backward weights
            ],
            out_specs=(
                pl.BlockSpec((T, TB, H), lambda i: (0, i, 0)),     # fwd, lane-dense
                pl.BlockSpec((T, TB, H), lambda i: (0, i, 0)),     # bwd, lane-dense
            ),
            scratch_shapes=[pltpu.VMEM((T, TB, G), jnp.float32),   # gi forward
                            pltpu.VMEM((T, TB, G), jnp.float32)],  # gi backward
        ),
        compiler_params=pltpu.CompilerParams(
            dimension_semantics=("parallel",),
            vmem_limit_bytes=32 * 1024 * 1024),
    )(x_tm, wih_f, whh_f, bih_f, bhh_f, wih_b, whh_b, bih_b, bhh_b)

    out_tm = jnp.concatenate([out_f[:, :B, :], out_b[:, :B, :]], axis=-1)  # (T,B,2H)
    return jnp.transpose(out_tm, (1, 0, 2))       # back to (B, T, 2H)


# ----------------------------------------------------------------------------
# Pure-JAX reference (mirrors torch.nn.GRU exactly) for a correctness check
# ----------------------------------------------------------------------------
def _gru_dir_ref(x, wih, whh, bih, bhh, reverse):
    B, T, D = x.shape
    H = whh.shape[1]
    xs = jnp.flip(x, axis=1) if reverse else x

    def step(h, x_t):
        gi = x_t @ wih.T + bih
        gh = h @ whh.T + bhh
        r = jax.nn.sigmoid(gi[:, 0:H] + gh[:, 0:H])
        z = jax.nn.sigmoid(gi[:, H:2 * H] + gh[:, H:2 * H])
        n = jnp.tanh(gi[:, 2 * H:] + r * gh[:, 2 * H:])
        h_new = (1.0 - z) * n + z * h
        return h_new, h_new

    _, ys = lax.scan(step, jnp.zeros((B, H), x.dtype), jnp.swapaxes(xs, 0, 1))
    ys = jnp.swapaxes(ys, 0, 1)
    return jnp.flip(ys, axis=1) if reverse else ys


def gru_block_reference(x, p):
    fwd = _gru_dir_ref(x, p["wih_f"], p["whh_f"], p["bih_f"], p["bhh_f"], False)
    bwd = _gru_dir_ref(x, p["wih_b"], p["whh_b"], p["bih_b"], p["bhh_b"], True)
    return jnp.concatenate([fwd, bwd], axis=-1)


# ----------------------------------------------------------------------------
# Deterministic parameter init (PyTorch GRU default: U(-1/sqrt(H), 1/sqrt(H)))
# ----------------------------------------------------------------------------
def init_gru_params(key, inplanes, planes):
    H, D = planes, inplanes
    k = 1.0 / jnp.sqrt(jnp.float32(H))
    names_shapes = [
        ("wih_f", (3 * H, D)), ("whh_f", (3 * H, H)),
        ("bih_f", (3 * H,)),   ("bhh_f", (3 * H,)),
        ("wih_b", (3 * H, D)), ("whh_b", (3 * H, H)),
        ("bih_b", (3 * H,)),   ("bhh_b", (3 * H,)),
    ]
    keys = jax.random.split(key, len(names_shapes))
    return {
        name: jax.random.uniform(kk, shape, jnp.float32, -k, k)
        for (name, shape), kk in zip(names_shapes, keys)
    }


if __name__ == "__main__":
    inplanes, planes = 16, 32     # GRUBlock(inplanes=16, planes=32) -> out_channels=64
    B, T = 2, 8

    key = jax.random.PRNGKey(0)
    kx, kp = jax.random.split(key)
    x = jax.random.normal(kx, (B, T, inplanes), jnp.float32)
    params = init_gru_params(kp, inplanes, planes)

    out = gru_block_forward(x, params)
    out = jax.block_until_ready(out)

    ref = gru_block_reference(x, params)
    assert out.shape == (B, T, 2 * planes), out.shape
    assert jnp.allclose(out, ref, atol=1e-4, rtol=1e-4), "mismatch vs reference"

    print("KERNEL_OK")
</pallas_src>

<mosaic_0001>
module attributes {stable_mosaic.version = 11 : i64} {
  func.func @bigru_kernel(%arg0: i32, %arg1: memref<8x8x16xf32, #tpu.memory_space<vmem>>, %arg2: memref<16x96xf32, #tpu.memory_space<vmem>>, %arg3: memref<32x96xf32, #tpu.memory_space<vmem>>, %arg4: memref<1x96xf32, #tpu.memory_space<vmem>>, %arg5: memref<1x96xf32, #tpu.memory_space<vmem>>, %arg6: memref<16x96xf32, #tpu.memory_space<vmem>>, %arg7: memref<32x96xf32, #tpu.memory_space<vmem>>, %arg8: memref<1x96xf32, #tpu.memory_space<vmem>>, %arg9: memref<1x96xf32, #tpu.memory_space<vmem>>, %arg10: memref<8x8x32xf32, #tpu.memory_space<vmem>>, %arg11: memref<8x8x32xf32, #tpu.memory_space<vmem>>, %arg12: memref<8x8x96xf32, #tpu.memory_space<vmem>>, %arg13: memref<8x8x96xf32, #tpu.memory_space<vmem>>) attributes {dimension_semantics = [#tpu.dimension_semantics<parallel>], iteration_bounds = array<i64: 1>, scalar_prefetch = 0 : i64, scratch_operands = 2 : i64, tpu.core_type = #tpu.core_type<tc>, window_params = [{transform_indices = @transform_0, window_bounds = array<i64: 8, 8, 16>}, {pipeline_mode = #tpu.pipeline_mode<synchronous>, transform_indices = @transform_1, window_bounds = array<i64: 16, 96>}, {pipeline_mode = #tpu.pipeline_mode<synchronous>, transform_indices = @transform_2, window_bounds = array<i64: 32, 96>}, {pipeline_mode = #tpu.pipeline_mode<synchronous>, transform_indices = @transform_3, window_bounds = array<i64: 1, 96>}, {pipeline_mode = #tpu.pipeline_mode<synchronous>, transform_indices = @transform_4, window_bounds = array<i64: 1, 96>}, {pipeline_mode = #tpu.pipeline_mode<synchronous>, transform_indices = @transform_5, window_bounds = array<i64: 16, 96>}, {pipeline_mode = #tpu.pipeline_mode<synchronous>, transform_indices = @transform_6, window_bounds = array<i64: 32, 96>}, {pipeline_mode = #tpu.pipeline_mode<synchronous>, transform_indices = @transform_7, window_bounds = array<i64: 1, 96>}, {pipeline_mode = #tpu.pipeline_mode<synchronous>, transform_indices = @transform_8, window_bounds = array<i64: 1, 96>}, {transform_indices = @transform_9, window_bounds = array<i64: 8, 8, 32>}, {transform_indices = @transform_10, window_bounds = array<i64: 8, 8, 32>}]} {
    %c0 = arith.constant 0 : index
    %c0_0 = arith.constant 0 : index
    %0 = vector.load %arg2[%c0, %c0_0] : memref<16x96xf32, #tpu.memory_space<vmem>>, vector<16x96xf32>
    %c0_1 = arith.constant 0 : index
    %c0_2 = arith.constant 0 : index
    %1 = vector.load %arg3[%c0_1, %c0_2] : memref<32x96xf32, #tpu.memory_space<vmem>>, vector<32x96xf32>
    %c0_3 = arith.constant 0 : index
    %c0_4 = arith.constant 0 : index
    %2 = vector.load %arg6[%c0_3, %c0_4] : memref<16x96xf32, #tpu.memory_space<vmem>>, vector<16x96xf32>
    %c0_5 = arith.constant 0 : index
    %c0_6 = arith.constant 0 : index
    %3 = vector.load %arg7[%c0_5, %c0_6] : memref<32x96xf32, #tpu.memory_space<vmem>>, vector<32x96xf32>
    %c0_7 = arith.constant 0 : index
    %c0_8 = arith.constant 0 : index
    %4 = vector.load %arg4[%c0_7, %c0_8] : memref<1x96xf32, #tpu.memory_space<vmem>>, vector<1x96xf32>
    %c0_9 = arith.constant 0 : index
    %c0_10 = arith.constant 0 : index
    %5 = vector.load %arg8[%c0_9, %c0_10] : memref<1x96xf32, #tpu.memory_space<vmem>>, vector<1x96xf32>
    %c0_11 = arith.constant 0 : index
    %c0_12 = arith.constant 0 : index
    %6 = vector.load %arg5[%c0_11, %c0_12] : memref<1x96xf32, #tpu.memory_space<vmem>>, vector<1x96xf32>
    %7 = vector.shape_cast %6 : vector<1x96xf32> to vector<1x96xf32>
    %8 = vector.broadcast %7 : vector<1x96xf32> to vector<8x96xf32>
    %c0_13 = arith.constant 0 : index
    %c0_14 = arith.constant 0 : index
    %9 = vector.load %arg9[%c0_13, %c0_14] : memref<1x96xf32, #tpu.memory_space<vmem>>, vector<1x96xf32>
    %10 = vector.shape_cast %9 : vector<1x96xf32> to vector<1x96xf32>
    %11 = vector.broadcast %10 : vector<1x96xf32> to vector<8x96xf32>
    %c0_15 = arith.constant 0 : index
    %c0_16 = arith.constant 0 : index
    %c0_17 = arith.constant 0 : index
    %12 = vector.load %arg1[%c0_15, %c0_16, %c0_17] : memref<8x8x16xf32, #tpu.memory_space<vmem>>, vector<8x8x16xf32>
    %13 = vector.shape_cast %12 : vector<8x8x16xf32> to vector<64x16xf32>
    %cst = arith.constant dense<0.000000e+00> : vector<64x96xf32>
    %14 = tpu.matmul %13, %0, %cst {dimension_numbers = #tpu.dot_dimension_numbers<[1], [0], [0], [1], [0, 0, 1, 1], [], []>} : vector<64x16xf32>, vector<16x96xf32>, vector<64x96xf32> -> vector<64x96xf32>
    %15 = vector.broadcast %4 : vector<1x96xf32> to vector<64x96xf32>
    %16 = arith.addf %14, %15 : vector<64x96xf32>
    %17 = vector.shape_cast %16 : vector<64x96xf32> to vector<8x8x96xf32>
    %c0_18 = arith.constant 0 : index
    %c0_19 = arith.constant 0 : index
    %c0_20 = arith.constant 0 : index
    %18 = vector.load %arg12[%c0_18, %c0_19, %c0_20] : memref<8x8x96xf32, #tpu.memory_space<vmem>>, vector<8x8x96xf32>
    tpu.vector_store %arg12[%c0_18, %c0_19, %c0_20], %17 {strides = array<i32>} : memref<8x8x96xf32, #tpu.memory_space<vmem>>, vector<8x8x96xf32>,
    %cst_21 = arith.constant dense<0.000000e+00> : vector<64x96xf32>
    %19 = tpu.matmul %13, %2, %cst_21 {dimension_numbers = #tpu.dot_dimension_numbers<[1], [0], [0], [1], [0, 0, 1, 1], [], []>} : vector<64x16xf32>, vector<16x96xf32>, vector<64x96xf32> -> vector<64x96xf32>
    %20 = vector.broadcast %5 : vector<1x96xf32> to vector<64x96xf32>
    %21 = arith.addf %19, %20 : vector<64x96xf32>
    %22 = vector.shape_cast %21 : vector<64x96xf32> to vector<8x8x96xf32>
    %c0_22 = arith.constant 0 : index
    %c0_23 = arith.constant 0 : index
    %c0_24 = arith.constant 0 : index
    %23 = vector.load %arg13[%c0_22, %c0_23, %c0_24] : memref<8x8x96xf32, #tpu.memory_space<vmem>>, vector<8x8x96xf32>
    tpu.vector_store %arg13[%c0_22, %c0_23, %c0_24], %22 {strides = array<i32>} : memref<8x8x96xf32, #tpu.memory_space<vmem>>, vector<8x8x96xf32>,
    %cst_25 = arith.constant 0.000000e+00 : f32
    %24 = vector.broadcast %cst_25 : f32 to vector<8x32xf32>
    %c0_i32 = arith.constant 0 : i32
    %c7_i32 = arith.constant 7 : i32
    %25 = arith.subi %c7_i32, %c0_i32 : i32
    %cst_26 = arith.constant dense<0.000000e+00> : vector<8x96xf32>
    %26 = tpu.matmul %24, %1, %cst_26 {dimension_numbers = #tpu.dot_dimension_numbers<[1], [0], [0], [1], [0, 0, 1, 1], [], []>} : vector<8x32xf32>, vector<32x96xf32>, vector<8x96xf32> -> vector<8x96xf32>
    %27 = arith.addf %26, %8 : vector<8x96xf32>
    %cst_27 = arith.constant dense<0.000000e+00> : vector<8x96xf32>
    %28 = tpu.matmul %24, %3, %cst_27 {dimension_numbers = #tpu.dot_dimension_numbers<[1], [0], [0], [1], [0, 0, 1, 1], [], []>} : vector<8x32xf32>, vector<32x96xf32>, vector<8x96xf32> -> vector<8x96xf32>
    %29 = arith.addf %28, %11 : vector<8x96xf32>
    %30 = arith.index_cast %c0_i32 : i32 to index
    %c0_28 = arith.constant 0 : index
    %c0_29 = arith.constant 0 : index
    %31 = vector.load %arg12[%30, %c0_28, %c0_29] : memref<8x8x96xf32, #tpu.memory_space<vmem>>, vector<1x8x96xf32>
    %32 = vector.shape_cast %31 : vector<1x8x96xf32> to vector<8x96xf32>
    %33 = vector.extract_strided_slice %32 {offsets = [0, 0], sizes = [8, 32], strides = [1, 1]} : vector<8x96xf32> to vector<8x32xf32>
    %34 = vector.extract_strided_slice %27 {offsets = [0, 0], sizes = [8, 32], strides = [1, 1]} : vector<8x96xf32> to vector<8x32xf32>
    %35 = arith.addf %33, %34 : vector<8x32xf32>
    %36 = arith.negf %35 : vector<8x32xf32>
    %37 = math.exp %36 : vector<8x32xf32>
    %cst_30 = arith.constant 1.000000e+00 : f32
    %38 = vector.broadcast %cst_30 : f32 to vector<8x32xf32>
    %39 = arith.addf %38, %37 : vector<8x32xf32>
    %40 = arith.divf %38, %39 : vector<8x32xf32>
    %41 = vector.extract_strided_slice %32 {offsets = [0, 32], sizes = [8, 32], strides = [1, 1]} : vector<8x96xf32> to vector<8x32xf32>
    %42 = vector.extract_strided_slice %27 {offsets = [0, 32], sizes = [8, 32], strides = [1, 1]} : vector<8x96xf32> to vector<8x32xf32>
    %43 = arith.addf %41, %42 : vector<8x32xf32>
    %44 = arith.negf %43 : vector<8x32xf32>
    %45 = math.exp %44 : vector<8x32xf32>
    %cst_31 = arith.constant 1.000000e+00 : f32
    %46 = vector.broadcast %cst_31 : f32 to vector<8x32xf32>
    %47 = arith.addf %46, %45 : vector<8x32xf32>
    %48 = arith.divf %46, %47 : vector<8x32xf32>
    %49 = vector.extract_strided_slice %32 {offsets = [0, 64], sizes = [8, 32], strides = [1, 1]} : vector<8x96xf32> to vector<8x32xf32>
    %50 = vector.extract_strided_slice %27 {offsets = [0, 64], sizes = [8, 32], strides = [1, 1]} : vector<8x96xf32> to vector<8x32xf32>
    %51 = arith.mulf %40, %50 : vector<8x32xf32>
    %52 = arith.addf %49, %51 : vector<8x32xf32>
    %53 = math.tanh %52 : vector<8x32xf32>
    %cst_32 = arith.constant 1.000000e+00 : f32
    %54 = vector.broadcast %cst_32 : f32 to vector<8x32xf32>
    %55 = arith.subf %54, %48 : vector<8x32xf32>
    %56 = arith.mulf %55, %53 : vector<8x32xf32>
    %57 = arith.mulf %48, %24 : vector<8x32xf32>
    %58 = arith.addf %56, %57 : vector<8x32xf32>
    %59 = arith.index_cast %25 : i32 to index
    %c0_33 = arith.constant 0 : index
    %c0_34 = arith.constant 0 : index
    %60 = vector.load %arg13[%59, %c0_33, %c0_34] : memref<8x8x96xf32, #tpu.memory_space<vmem>>, vector<1x8x96xf32>
    %61 = vector.shape_cast %60 : vector<1x8x96xf32> to vector<8x96xf32>
    %62 = vector.extract_strided_slice %61 {offsets = [0, 0], sizes = [8, 32], strides = [1, 1]} : vector<8x96xf32> to vector<8x32xf32>
    %63 = vector.extract_strided_slice %29 {offsets = [0, 0], sizes = [8, 32], strides = [1, 1]} : vector<8x96xf32> to vector<8x32xf32>
    %64 = arith.addf %62, %63 : vector<8x32xf32>
    %65 = arith.negf %64 : vector<8x32xf32>
    %66 = math.exp %65 : vector<8x32xf32>
    %cst_35 = arith.constant 1.000000e+00 : f32
    %67 = vector.broadcast %cst_35 : f32 to vector<8x32xf32>
    %68 = arith.addf %67, %66 : vector<8x32xf32>
    %69 = arith.divf %67, %68 : vector<8x32xf32>
    %70 = vector.extract_strided_slice %61 {offsets = [0, 32], sizes = [8, 32], strides = [1, 1]} : vector<8x96xf32> to vector<8x32xf32>
    %71 = vector.extract_strided_slice %29 {offsets = [0, 32], sizes = [8, 32], strides = [1, 1]} : vector<8x96xf32> to vector<8x32xf32>
    %72 = arith.addf %70, %71 : vector<8x32xf32>
    %73 = arith.negf %72 : vector<8x32xf32>
    %74 = math.exp %73 : vector<8x32xf32>
    %cst_36 = arith.constant 1.000000e+00 : f32
    %75 = vector.broadcast %cst_36 : f32 to vector<8x32xf32>
    %76 = arith.addf %75, %74 : vector<8x32xf32>
    %77 = arith.divf %75, %76 : vector<8x32xf32>
    %78 = vector.extract_strided_slice %61 {offsets = [0, 64], sizes = [8, 32], strides = [1, 1]} : vector<8x96xf32> to vector<8x32xf32>
    %79 = vector.extract_strided_slice %29 {offsets = [0, 64], sizes = [8, 32], strides = [1, 1]} : vector<8x96xf32> to vector<8x32xf32>
    %80 = arith.mulf %69, %79 : vector<8x32xf32>
    %81 = arith.addf %78, %80 : vector<8x32xf32>
    %82 = math.tanh %81 : vector<8x32xf32>
    %cst_37 = arith.constant 1.000000e+00 : f32
    %83 = vector.broadcast %cst_37 : f32 to vector<8x32xf32>
    %84 = arith.subf %83, %77 : vector<8x32xf32>
    %85 = arith.mulf %84, %82 : vector<8x32xf32>
    %86 = arith.mulf %77, %24 : vector<8x32xf32>
    %87 = arith.addf %85, %86 : vector<8x32xf32>
    %88 = arith.index_cast %c0_i32 : i32 to index
    %c0_38 = arith.constant 0 : index
    %c0_39 = arith.constant 0 : index
    %89 = vector.load %arg10[%88, %c0_38, %c0_39] : memref<8x8x32xf32, #tpu.memory_space<vmem>>, vector<1x8x32xf32>
    %90 = vector.shape_cast %89 : vector<1x8x32xf32> to vector<8x32xf32>
    %91 = vector.shape_cast %58 : vector<8x32xf32> to vector<1x8x32xf32>
    tpu.vector_store %arg10[%88, %c0_38, %c0_39], %91 {strides = array<i32>} : memref<8x8x32xf32, #tpu.memory_space<vmem>>, vector<1x8x32xf32>,
    %92 = arith.index_cast %25 : i32 to index
    %c0_40 = arith.constant 0 : index
    %c0_41 = arith.constant 0 : index
    %93 = vector.load %arg11[%92, %c0_40, %c0_41] : memref<8x8x32xf32, #tpu.memory_space<vmem>>, vector<1x8x32xf32>
    %94 = vector.shape_cast %93 : vector<1x8x32xf32> to vector<8x32xf32>
    %95 = vector.shape_cast %87 : vector<8x32xf32> to vector<1x8x32xf32>
    tpu.vector_store %arg11[%92, %c0_40, %c0_41], %95 {strides = array<i32>} : memref<8x8x32xf32, #tpu.memory_space<vmem>>, vector<1x8x32xf32>,
    %c1_i32 = arith.constant 1 : i32
    %c7_i32_42 = arith.constant 7 : i32
    %96 = arith.subi %c7_i32_42, %c1_i32 : i32
    %cst_43 = arith.constant dense<0.000000e+00> : vector<8x96xf32>
    %97 = tpu.matmul %58, %1, %cst_43 {dimension_numbers = #tpu.dot_dimension_numbers<[1], [0], [0], [1], [0, 0, 1, 1], [], []>} : vector<8x32xf32>, vector<32x96xf32>, vector<8x96xf32> -> vector<8x96xf32>
    %98 = arith.addf %97, %8 : vector<8x96xf32>
    %cst_44 = arith.constant dense<0.000000e+00> : vector<8x96xf32>
    %99 = tpu.matmul %87, %3, %cst_44 {dimension_numbers = #tpu.dot_dimension_numbers<[1], [0], [0], [1], [0, 0, 1, 1], [], []>} : vector<8x32xf32>, vector<32x96xf32>, vector<8x96xf32> -> vector<8x96xf32>
    %100 = arith.addf %99, %11 : vector<8x96xf32>
    %101 = arith.index_cast %c1_i32 : i32 to index
    %c0_45 = arith.constant 0 : index
    %c0_46 = arith.constant 0 : index
    %102 = vector.load %arg12[%101, %c0_45, %c0_46] : memref<8x8x96xf32, #tpu.memory_space<vmem>>, vector<1x8x96xf32>
    %103 = vector.shape_cast %102 : vector<1x8x96xf32> to vector<8x96xf32>
    %104 = vector.extract_strided_slice %103 {offsets = [0, 0], sizes = [8, 32], strides = [1, 1]} : vector<8x96xf32> to vector<8x32xf32>
    %105 = vector.extract_strided_slice %98 {offsets = [0, 0], sizes = [8, 32], strides = [1, 1]} : vector<8x96xf32> to vector<8x32xf32>
    %106 = arith.addf %104, %105 : vector<8x32xf32>
    %107 = arith.negf %106 : vector<8x32xf32>
    %108 = math.exp %107 : vector<8x32xf32>
    %cst_47 = arith.constant 1.000000e+00 : f32
    %109 = vector.broadcast %cst_47 : f32 to vector<8x32xf32>
    %110 = arith.addf %109, %108 : vector<8x32xf32>
    %111 = arith.divf %109, %110 : vector<8x32xf32>
    %112 = vector.extract_strided_slice %103 {offsets = [0, 32], sizes = [8, 32], strides = [1, 1]} : vector<8x96xf32> to vector<8x32xf32>
    %113 = vector.extract_strided_slice %98 {offsets = [0, 32], sizes = [8, 32], strides = [1, 1]} : vector<8x96xf32> to vector<8x32xf32>
    %114 = arith.addf %112, %113 : vector<8x32xf32>
    %115 = arith.negf %114 : vector<8x32xf32>
    %116 = math.exp %115 : vector<8x32xf32>
    %cst_48 = arith.constant 1.000000e+00 : f32
    %117 = vector.broadcast %cst_48 : f32 to vector<8x32xf32>
    %118 = arith.addf %117, %116 : vector<8x32xf32>
    %119 = arith.divf %117, %118 : vector<8x32xf32>
    %120 = vector.extract_strided_slice %103 {offsets = [0, 64], sizes = [8, 32], strides = [1, 1]} : vector<8x96xf32> to vector<8x32xf32>
    %121 = vector.extract_strided_slice %98 {offsets = [0, 64], sizes = [8, 32], strides = [1, 1]} : vector<8x96xf32> to vector<8x32xf32>
    %122 = arith.mulf %111, %121 : vector<8x32xf32>
    %123 = arith.addf %120, %122 : vector<8x32xf32>
    %124 = math.tanh %123 : vector<8x32xf32>
    %cst_49 = arith.constant 1.000000e+00 : f32
    %125 = vector.broadcast %cst_49 : f32 to vector<8x32xf32>
    %126 = arith.subf %125, %119 : vector<8x32xf32>
    %127 = arith.mulf %126, %124 : vector<8x32xf32>
    %128 = arith.mulf %119, %58 : vector<8x32xf32>
    %129 = arith.addf %127, %128 : vector<8x32xf32>
    %130 = arith.index_cast %96 : i32 to index
    %c0_50 = arith.constant 0 : index
    %c0_51 = arith.constant 0 : index
    %131 = vector.load %arg13[%130, %c0_50, %c0_51] : memref<8x8x96xf32, #tpu.memory_space<vmem>>, vector<1x8x96xf32>
    %132 = vector.shape_cast %131 : vector<1x8x96xf32> to vector<8x96xf32>
    %133 = vector.extract_strided_slice %132 {offsets = [0, 0], sizes = [8, 32], strides = [1, 1]} : vector<8x96xf32> to vector<8x32xf32>
    %134 = vector.extract_strided_slice %100 {offsets = [0, 0], sizes = [8, 32], strides = [1, 1]} : vector<8x96xf32> to vector<8x32xf32>
    %135 = arith.addf %133, %134 : vector<8x32xf32>
    %136 = arith.negf %135 : vector<8x32xf32>
    %137 = math.exp %136 : vector<8x32xf32>
    %cst_52 = arith.constant 1.000000e+00 : f32
    %138 = vector.broadcast %cst_52 : f32 to vector<8x32xf32>
    %139 = arith.addf %138, %137 : vector<8x32xf32>
    %140 = arith.divf %138, %139 : vector<8x32xf32>
    %141 = vector.extract_strided_slice %132 {offsets = [0, 32], sizes = [8, 32], strides = [1, 1]} : vector<8x96xf32> to vector<8x32xf32>
    %142 = vector.extract_strided_slice %100 {offsets = [0, 32], sizes = [8, 32], strides = [1, 1]} : vector<8x96xf32> to vector<8x32xf32>
    %143 = arith.addf %141, %142 : vector<8x32xf32>
    %144 = arith.negf %143 : vector<8x32xf32>
    %145 = math.exp %144 : vector<8x32xf32>
    %cst_53 = arith.constant 1.000000e+00 : f32
    %146 = vector.broadcast %cst_53 : f32 to vector<8x32xf32>
    %147 = arith.addf %146, %145 : vector<8x32xf32>
    %148 = arith.divf %146, %147 : vector<8x32xf32>
    %149 = vector.extract_strided_slice %132 {offsets = [0, 64], sizes = [8, 32], strides = [1, 1]} : vector<8x96xf32> to vector<8x32xf32>
    %150 = vector.extract_strided_slice %100 {offsets = [0, 64], sizes = [8, 32], strides = [1, 1]} : vector<8x96xf32> to vector<8x32xf32>
    %151 = arith.mulf %140, %150 : vector<8x32xf32>
    %152 = arith.addf %149, %151 : vector<8x32xf32>
    %153 = math.tanh %152 : vector<8x32xf32>
    %cst_54 = arith.constant 1.000000e+00 : f32
    %154 = vector.broadcast %cst_54 : f32 to vector<8x32xf32>
    %155 = arith.subf %154, %148 : vector<8x32xf32>
    %156 = arith.mulf %155, %153 : vector<8x32xf32>
    %157 = arith.mulf %148, %87 : vector<8x32xf32>
    %158 = arith.addf %156, %157 : vector<8x32xf32>
    %159 = arith.index_cast %c1_i32 : i32 to index
    %c0_55 = arith.constant 0 : index
    %c0_56 = arith.constant 0 : index
    %160 = vector.load %arg10[%159, %c0_55, %c0_56] : memref<8x8x32xf32, #tpu.memory_space<vmem>>, vector<1x8x32xf32>
    %161 = vector.shape_cast %160 : vector<1x8x32xf32> to vector<8x32xf32>
    %162 = vector.shape_cast %129 : vector<8x32xf32> to vector<1x8x32xf32>
    tpu.vector_store %arg10[%159, %c0_55, %c0_56], %162 {strides = array<i32>} : memref<8x8x32xf32, #tpu.memory_space<vmem>>, vector<1x8x32xf32>,
    %163 = arith.index_cast %96 : i32 to index
    %c0_57 = arith.constant 0 : index
    %c0_58 = arith.constant 0 : index
    %164 = vector.load %arg11[%163, %c0_57, %c0_58] : memref<8x8x32xf32, #tpu.memory_space<vmem>>, vector<1x8x32xf32>
    %165 = vector.shape_cast %164 : vector<1x8x32xf32> to vector<8x32xf32>
    %166 = vector.shape_cast %158 : vector<8x32xf32> to vector<1x8x32xf32>
    tpu.vector_store %arg11[%163, %c0_57, %c0_58], %166 {strides = array<i32>} : memref<8x8x32xf32, #tpu.memory_space<vmem>>, vector<1x8x32xf32>,
    %c2_i32 = arith.constant 2 : i32
    %c7_i32_59 = arith.constant 7 : i32
    %167 = arith.subi %c7_i32_59, %c2_i32 : i32
    %cst_60 = arith.constant dense<0.000000e+00> : vector<8x96xf32>
    %168 = tpu.matmul %129, %1, %cst_60 {dimension_numbers = #tpu.dot_dimension_numbers<[1], [0], [0], [1], [0, 0, 1, 1], [], []>} : vector<8x32xf32>, vector<32x96xf32>, vector<8x96xf32> -> vector<8x96xf32>
    %169 = arith.addf %168, %8 : vector<8x96xf32>
    %cst_61 = arith.constant dense<0.000000e+00> : vector<8x96xf32>
    %170 = tpu.matmul %158, %3, %cst_61 {dimension_numbers = #tpu.dot_dimension_numbers<[1], [0], [0], [1], [0, 0, 1, 1], [], []>} : vector<8x32xf32>, vector<32x96xf32>, vector<8x96xf32> -> vector<8x96xf32>
    %171 = arith.addf %170, %11 : vector<8x96xf32>
    %172 = arith.index_cast %c2_i32 : i32 to index
    %c0_62 = arith.constant 0 : index
    %c0_63 = arith.constant 0 : index
    %173 = vector.load %arg12[%172, %c0_62, %c0_63] : memref<8x8x96xf32, #tpu.memory_space<vmem>>, vector<1x8x96xf32>
    %174 = vector.shape_cast %173 : vector<1x8x96xf32> to vector<8x96xf32>
    %175 = vector.extract_strided_slice %174 {offsets = [0, 0], sizes = [8, 32], strides = [1, 1]} : vector<8x96xf32> to vector<8x32xf32>
    %176 = vector.extract_strided_slice %169 {offsets = [0, 0], sizes = [8, 32], strides = [1, 1]} : vector<8x96xf32> to vector<8x32xf32>
    %177 = arith.addf %175, %176 : vector<8x32xf32>
    %178 = arith.negf %177 : vector<8x32xf32>
    %179 = math.exp %178 : vector<8x32xf32>
    %cst_64 = arith.constant 1.000000e+00 : f32
    %180 = vector.broadcast %cst_64 : f32 to vector<8x32xf32>
    %181 = arith.addf %180, %179 : vector<8x32xf32>
    %182 = arith.divf %180, %181 : vector<8x32xf32>
    %183 = vector.extract_strided_slice %174 {offsets = [0, 32], sizes = [8, 32], strides = [1, 1]} : vector<8x96xf32> to vector<8x32xf32>
    %184 = vector.extract_strided_slice %169 {offsets = [0, 32], sizes = [8, 32], strides = [1, 1]} : vector<8x96xf32> to vector<8x32xf32>
    %185 = arith.addf %183, %184 : vector<8x32xf32>
    %186 = arith.negf %185 : vector<8x32xf32>
    %187 = math.exp %186 : vector<8x32xf32>
    %cst_65 = arith.constant 1.000000e+00 : f32
    %188 = vector.broadcast %cst_65 : f32 to vector<8x32xf32>
    %189 = arith.addf %188, %187 : vector<8x32xf32>
    %190 = arith.divf %188, %189 : vector<8x32xf32>
    %191 = vector.extract_strided_slice %174 {offsets = [0, 64], sizes = [8, 32], strides = [1, 1]} : vector<8x96xf32> to vector<8x32xf32>
    %192 = vector.extract_strided_slice %169 {offsets = [0, 64], sizes = [8, 32], strides = [1, 1]} : vector<8x96xf32> to vector<8x32xf32>
    %193 = arith.mulf %182, %192 : vector<8x32xf32>
    %194 = arith.addf %191, %193 : vector<8x32xf32>
    %195 = math.tanh %194 : vector<8x32xf32>
    %cst_66 = arith.constant 1.000000e+00 : f32
    %196 = vector.broadcast %cst_66 : f32 to vector<8x32xf32>
    %197 = arith.subf %196, %190 : vector<8x32xf32>
    %198 = arith.mulf %197, %195 : vector<8x32xf32>
    %199 = arith.mulf %190, %129 : vector<8x32xf32>
    %200 = arith.addf %198, %199 : vector<8x32xf32>
    %201 = arith.index_cast %167 : i32 to index
    %c0_67 = arith.constant 0 : index
    %c0_68 = arith.constant 0 : index
    %202 = vector.load %arg13[%201, %c0_67, %c0_68] : memref<8x8x96xf32, #tpu.memory_space<vmem>>, vector<1x8x96xf32>
    %203 = vector.shape_cast %202 : vector<1x8x96xf32> to vector<8x96xf32>
    %204 = vector.extract_strided_slice %203 {offsets = [0, 0], sizes = [8, 32], strides = [1, 1]} : vector<8x96xf32> to vector<8x32xf32>
    %205 = vector.extract_strided_slice %171 {offsets = [0, 0], sizes = [8, 32], strides = [1, 1]} : vector<8x96xf32> to vector<8x32xf32>
    %206 = arith.addf %204, %205 : vector<8x32xf32>
    %207 = arith.negf %206 : vector<8x32xf32>
    %208 = math.exp %207 : vector<8x32xf32>
    %cst_69 = arith.constant 1.000000e+00 : f32
    %209 = vector.broadcast %cst_69 : f32 to vector<8x32xf32>
    %210 = arith.addf %209, %208 : vector<8x32xf32>
    %211 = arith.divf %209, %210 : vector<8x32xf32>
    %212 = vector.extract_strided_slice %203 {offsets = [0, 32], sizes = [8, 32], strides = [1, 1]} : vector<8x96xf32> to vector<8x32xf32>
    %213 = vector.extract_strided_slice %171 {offsets = [0, 32], sizes = [8, 32], strides = [1, 1]} : vector<8x96xf32> to vector<8x32xf32>
    %214 = arith.addf %212, %213 : vector<8x32xf32>
    %215 = arith.negf %214 : vector<8x32xf32>
    %216 = math.exp %215 : vector<8x32xf32>
    %cst_70 = arith.constant 1.000000e+00 : f32
    %217 = vector.broadcast %cst_70 : f32 to vector<8x32xf32>
    %218 = arith.addf %217, %216 : vector<8x32xf32>
    %219 = arith.divf %217, %218 : vector<8x32xf32>
    %220 = vector.extract_strided_slice %203 {offsets = [0, 64], sizes = [8, 32], strides = [1, 1]} : vector<8x96xf32> to vector<8x32xf32>
    %221 = vector.extract_strided_slice %171 {offsets = [0, 64], sizes = [8, 32], strides = [1, 1]} : vector<8x96xf32> to vector<8x32xf32>
    %222 = arith.mulf %211, %221 : vector<8x32xf32>
    %223 = arith.addf %220, %222 : vector<8x32xf32>
    %224 = math.tanh %223 : vector<8x32xf32>
    %cst_71 = arith.constant 1.000000e+00 : f32
    %225 = vector.broadcast %cst_71 : f32 to vector<8x32xf32>
    %226 = arith.subf %225, %219 : vector<8x32xf32>
    %227 = arith.mulf %226, %224 : vector<8x32xf32>
    %228 = arith.mulf %219, %158 : vector<8x32xf32>
    %229 = arith.addf %227, %228 : vector<8x32xf32>
    %230 = arith.index_cast %c2_i32 : i32 to index
    %c0_72 = arith.constant 0 : index
    %c0_73 = arith.constant 0 : index
    %231 = vector.load %arg10[%230, %c0_72, %c0_73] : memref<8x8x32xf32, #tpu.memory_space<vmem>>, vector<1x8x32xf32>
    %232 = vector.shape_cast %231 : vector<1x8x32xf32> to vector<8x32xf32>
    %233 = vector.shape_cast %200 : vector<8x32xf32> to vector<1x8x32xf32>
    tpu.vector_store %arg10[%230, %c0_72, %c0_73], %233 {strides = array<i32>} : memref<8x8x32xf32, #tpu.memory_space<vmem>>, vector<1x8x32xf32>,
    %234 = arith.index_cast %167 : i32 to index
    %c0_74 = arith.constant 0 : index
    %c0_75 = arith.constant 0 : index
    %235 = vector.load %arg11[%234, %c0_74, %c0_75] : memref<8x8x32xf32, #tpu.memory_space<vmem>>, vector<1x8x32xf32>
    %236 = vector.shape_cast %235 : vector<1x8x32xf32> to vector<8x32xf32>
    %237 = vector.shape_cast %229 : vector<8x32xf32> to vector<1x8x32xf32>
    tpu.vector_store %arg11[%234, %c0_74, %c0_75], %237 {strides = array<i32>} : memref<8x8x32xf32, #tpu.memory_space<vmem>>, vector<1x8x32xf32>,
    %c3_i32 = arith.constant 3 : i32
    %c7_i32_76 = arith.constant 7 : i32
    %238 = arith.subi %c7_i32_76, %c3_i32 : i32
    %cst_77 = arith.constant dense<0.000000e+00> : vector<8x96xf32>
    %239 = tpu.matmul %200, %1, %cst_77 {dimension_numbers = #tpu.dot_dimension_numbers<[1], [0], [0], [1], [0, 0, 1, 1], [], []>} : vector<8x32xf32>, vector<32x96xf32>, vector<8x96xf32> -> vector<8x96xf32>
    %240 = arith.addf %239, %8 : vector<8x96xf32>
    %cst_78 = arith.constant dense<0.000000e+00> : vector<8x96xf32>
    %241 = tpu.matmul %229, %3, %cst_78 {dimension_numbers = #tpu.dot_dimension_numbers<[1], [0], [0], [1], [0, 0, 1, 1], [], []>} : vector<8x32xf32>, vector<32x96xf32>, vector<8x96xf32> -> vector<8x96xf32>
    %242 = arith.addf %241, %11 : vector<8x96xf32>
    %243 = arith.index_cast %c3_i32 : i32 to index
    %c0_79 = arith.constant 0 : index
    %c0_80 = arith.constant 0 : index
    %244 = vector.load %arg12[%243, %c0_79, %c0_80] : memref<8x8x96xf32, #tpu.memory_space<vmem>>, vector<1x8x96xf32>
    %245 = vector.shape_cast %244 : vector<1x8x96xf32> to vector<8x96xf32>
    %246 = vector.extract_strided_slice %245 {offsets = [0, 0], sizes = [8, 32], strides = [1, 1]} : vector<8x96xf32> to vector<8x32xf32>
    %247 = vector.extract_strided_slice %240 {offsets = [0, 0], sizes = [8, 32], strides = [1, 1]} : vector<8x96xf32> to vector<8x32xf32>
    %248 = arith.addf %246, %247 : vector<8x32xf32>
    %249 = arith.negf %248 : vector<8x32xf32>
    %250 = math.exp %249 : vector<8x32xf32>
    %cst_81 = arith.constant 1.000000e+00 : f32
    %251 = vector.broadcast %cst_81 : f32 to vector<8x32xf32>
    %252 = arith.addf %251, %250 : vector<8x32xf32>
    %253 = arith.divf %251, %252 : vector<8x32xf32>
    %254 = vector.extract_strided_slice %245 {offsets = [0, 32], sizes = [8, 32], strides = [1, 1]} : vector<8x96xf32> to vector<8x32xf32>
    %255 = vector.extract_strided_slice %240 {offsets = [0, 32], sizes = [8, 32], strides = [1, 1]} : vector<8x96xf32> to vector<8x32xf32>
    %256 = arith.addf %254, %255 : vector<8x32xf32>
    %257 = arith.negf %256 : vector<8x32xf32>
    %258 = math.exp %257 : vector<8x32xf32>
    %cst_82 = arith.constant 1.000000e+00 : f32
    %259 = vector.broadcast %cst_82 : f32 to vector<8x32xf32>
    %260 = arith.addf %259, %258 : vector<8x32xf32>
    %261 = arith.divf %259, %260 : vector<8x32xf32>
    %262 = vector.extract_strided_slice %245 {offsets = [0, 64], sizes = [8, 32], strides = [1, 1]} : vector<8x96xf32> to vector<8x32xf32>
    %263 = vector.extract_strided_slice %240 {offsets = [0, 64], sizes = [8, 32], strides = [1, 1]} : vector<8x96xf32> to vector<8x32xf32>
    %264 = arith.mulf %253, %263 : vector<8x32xf32>
    %265 = arith.addf %262, %264 : vector<8x32xf32>
    %266 = math.tanh %265 : vector<8x32xf32>
    %cst_83 = arith.constant 1.000000e+00 : f32
    %267 = vector.broadcast %cst_83 : f32 to vector<8x32xf32>
    %268 = arith.subf %267, %261 : vector<8x32xf32>
    %269 = arith.mulf %268, %266 : vector<8x32xf32>
    %270 = arith.mulf %261, %200 : vector<8x32xf32>
    %271 = arith.addf %269, %270 : vector<8x32xf32>
    %272 = arith.index_cast %238 : i32 to index
    %c0_84 = arith.constant 0 : index
    %c0_85 = arith.constant 0 : index
    %273 = vector.load %arg13[%272, %c0_84, %c0_85] : memref<8x8x96xf32, #tpu.memory_space<vmem>>, vector<1x8x96xf32>
    %274 = vector.shape_cast %273 : vector<1x8x96xf32> to vector<8x96xf32>
    %275 = vector.extract_strided_slice %274 {offsets = [0, 0], sizes = [8, 32], strides = [1, 1]} : vector<8x96xf32> to vector<8x32xf32>
    %276 = vector.extract_strided_slice %242 {offsets = [0, 0], sizes = [8, 32], strides = [1, 1]} : vector<8x96xf32> to vector<8x32xf32>
    %277 = arith.addf %275, %276 : vector<8x32xf32>
    %278 = arith.negf %277 : vector<8x32xf32>
    %279 = math.exp %278 : vector<8x32xf32>
    %cst_86 = arith.constant 1.000000e+00 : f32
    %280 = vector.broadcast %cst_86 : f32 to vector<8x32xf32>
    %281 = arith.addf %280, %279 : vector<8x32xf32>
    %282 = arith.divf %280, %281 : vector<8x32xf32>
    %283 = vector.extract_strided_slice %274 {offsets = [0, 32], sizes = [8, 32], strides = [1, 1]} : vector<8x96xf32> to vector<8x32xf32>
    %284 = vector.extract_strided_slice %242 {offsets = [0, 32], sizes = [8, 32], strides = [1, 1]} : vector<8x96xf32> to vector<8x32xf32>
    %285 = arith.addf %283, %284 : vector<8x32xf32>
    %286 = arith.negf %285 : vector<8x32xf32>
    %287 = math.exp %286 : vector<8x32xf32>
    %cst_87 = arith.constant 1.000000e+00 : f32
    %288 = vector.broadcast %cst_87 : f32 to vector<8x32xf32>
    %289 = arith.addf %288, %287 : vector<8x32xf32>
    %290 = arith.divf %288, %289 : vector<8x32xf32>
    %291 = vector.extract_strided_slice %274 {offsets = [0, 64], sizes = [8, 32], strides = [1, 1]} : vector<8x96xf32> to vector<8x32xf32>
    %292 = vector.extract_strided_slice %242 {offsets = [0, 64], sizes = [8, 32], strides = [1, 1]} : vector<8x96xf32> to vector<8x32xf32>
    %293 = arith.mulf %282, %292 : vector<8x32xf32>
    %294 = arith.addf %291, %293 : vector<8x32xf32>
    %295 = math.tanh %294 : vector<8x32xf32>
    %cst_88 = arith.constant 1.000000e+00 : f32
    %296 = vector.broadcast %cst_88 : f32 to vector<8x32xf32>
    %297 = arith.subf %296, %290 : vector<8x32xf32>
    %298 = arith.mulf %297, %295 : vector<8x32xf32>
    %299 = arith.mulf %290, %229 : vector<8x32xf32>
    %300 = arith.addf %298, %299 : vector<8x32xf32>
    %301 = arith.index_cast %c3_i32 : i32 to index
    %c0_89 = arith.constant 0 : index
    %c0_90 = arith.constant 0 : index
    %302 = vector.load %arg10[%301, %c0_89, %c0_90] : memref<8x8x32xf32, #tpu.memory_space<vmem>>, vector<1x8x32xf32>
    %303 = vector.shape_cast %302 : vector<1x8x32xf32> to vector<8x32xf32>
    %304 = vector.shape_cast %271 : vector<8x32xf32> to vector<1x8x32xf32>
    tpu.vector_store %arg10[%301, %c0_89, %c0_90], %304 {strides = array<i32>} : memref<8x8x32xf32, #tpu.memory_space<vmem>>, vector<1x8x32xf32>,
    %305 = arith.index_cast %238 : i32 to index
    %c0_91 = arith.constant 0 : index
    %c0_92 = arith.constant 0 : index
    %306 = vector.load %arg11[%305, %c0_91, %c0_92] : memref<8x8x32xf32, #tpu.memory_space<vmem>>, vector<1x8x32xf32>
    %307 = vector.shape_cast %306 : vector<1x8x32xf32> to vector<8x32xf32>
    %308 = vector.shape_cast %300 : vector<8x32xf32> to vector<1x8x32xf32>
    tpu.vector_store %arg11[%305, %c0_91, %c0_92], %308 {strides = array<i32>} : memref<8x8x32xf32, #tpu.memory_space<vmem>>, vector<1x8x32xf32>,
    %c4_i32 = arith.constant 4 : i32
    %c7_i32_93 = arith.constant 7 : i32
    %309 = arith.subi %c7_i32_93, %c4_i32 : i32
    %cst_94 = arith.constant dense<0.000000e+00> : vector<8x96xf32>
    %310 = tpu.matmul %271, %1, %cst_94 {dimension_numbers = #tpu.dot_dimension_numbers<[1], [0], [0], [1], [0, 0, 1, 1], [], []>} : vector<8x32xf32>, vector<32x96xf32>, vector<8x96xf32> -> vector<8x96xf32>
    %311 = arith.addf %310, %8 : vector<8x96xf32>
    %cst_95 = arith.constant dense<0.000000e+00> : vector<8x96xf32>
    %312 = tpu.matmul %300, %3, %cst_95 {dimension_numbers = #tpu.dot_dimension_numbers<[1], [0], [0], [1], [0, 0, 1, 1], [], []>} : vector<8x32xf32>, vector<32x96xf32>, vector<8x96xf32> -> vector<8x96xf32>
    %313 = arith.addf %312, %11 : vector<8x96xf32>
    %314 = arith.index_cast %c4_i32 : i32 to index
    %c0_96 = arith.constant 0 : index
    %c0_97 = arith.constant 0 : index
    %315 = vector.load %arg12[%314, %c0_96, %c0_97] : memref<8x8x96xf32, #tpu.memory_space<vmem>>, vector<1x8x96xf32>
    %316 = vector.shape_cast %315 : vector<1x8x96xf32> to vector<8x96xf32>
    %317 = vector.extract_strided_slice %316 {offsets = [0, 0], sizes = [8, 32], strides = [1, 1]} : vector<8x96xf32> to vector<8x32xf32>
    %318 = vector.extract_strided_slice %311 {offsets = [0, 0], sizes = [8, 32], strides = [1, 1]} : vector<8x96xf32> to vector<8x32xf32>
    %319 = arith.addf %317, %318 : vector<8x32xf32>
    %320 = arith.negf %319 : vector<8x32xf32>
    %321 = math.exp %320 : vector<8x32xf32>
    %cst_98 = arith.constant 1.000000e+00 : f32
    %322 = vector.broadcast %cst_98 : f32 to vector<8x32xf32>
    %323 = arith.addf %322, %321 : vector<8x32xf32>
    %324 = arith.divf %322, %323 : vector<8x32xf32>
    %325 = vector.extract_strided_slice %316 {offsets = [0, 32], sizes = [8, 32], strides = [1, 1]} : vector<8x96xf32> to vector<8x32xf32>
    %326 = vector.extract_strided_slice %311 {offsets = [0, 32], sizes = [8, 32], strides = [1, 1]} : vector<8x96xf32> to vector<8x32xf32>
    %327 = arith.addf %325, %326 : vector<8x32xf32>
    %328 = arith.negf %327 : vector<8x32xf32>
    %329 = math.exp %328 : vector<8x32xf32>
    %cst_99 = arith.constant 1.000000e+00 : f32
    %330 = vector.broadcast %cst_99 : f32 to vector<8x32xf32>
    %331 = arith.addf %330, %329 : vector<8x32xf32>
    %332 = arith.divf %330, %331 : vector<8x32xf32>
    %333 = vector.extract_strided_slice %316 {offsets = [0, 64], sizes = [8, 32], strides = [1, 1]} : vector<8x96xf32> to vector<8x32xf32>
    %334 = vector.extract_strided_slice %311 {offsets = [0, 64], sizes = [8, 32], strides = [1, 1]} : vector<8x96xf32> to vector<8x32xf32>
    %335 = arith.mulf %324, %334 : vector<8x32xf32>
    %336 = arith.addf %333, %335 : vector<8x32xf32>
    %337 = math.tanh %336 : vector<8x32xf32>
    %cst_100 = arith.constant 1.000000e+00 : f32
    %338 = vector.broadcast %cst_100 : f32 to vector<8x32xf32>
    %339 = arith.subf %338, %332 : vector<8x32xf32>
    %340 = arith.mulf %339, %337 : vector<8x32xf32>
    %341 = arith.mulf %332, %271 : vector<8x32xf32>
    %342 = arith.addf %340, %341 : vector<8x32xf32>
    %343 = arith.index_cast %309 : i32 to index
    %c0_101 = arith.constant 0 : index
    %c0_102 = arith.constant 0 : index
    %344 = vector.load %arg13[%343, %c0_101, %c0_102] : memref<8x8x96xf32, #tpu.memory_space<vmem>>, vector<1x8x96xf32>
    %345 = vector.shape_cast %344 : vector<1x8x96xf32> to vector<8x96xf32>
    %346 = vector.extract_strided_slice %345 {offsets = [0, 0], sizes = [8, 32], strides = [1, 1]} : vector<8x96xf32> to vector<8x32xf32>
    %347 = vector.extract_strided_slice %313 {offsets = [0, 0], sizes = [8, 32], strides = [1, 1]} : vector<8x96xf32> to vector<8x32xf32>
    %348 = arith.addf %346, %347 : vector<8x32xf32>
    %349 = arith.negf %348 : vector<8x32xf32>
    %350 = math.exp %349 : vector<8x32xf32>
    %cst_103 = arith.constant 1.000000e+00 : f32
    %351 = vector.broadcast %cst_103 : f32 to vector<8x32xf32>
    %352 = arith.addf %351, %350 : vector<8x32xf32>
    %353 = arith.divf %351, %352 : vector<8x32xf32>
    %354 = vector.extract_strided_slice %345 {offsets = [0, 32], sizes = [8, 32], strides = [1, 1]} : vector<8x96xf32> to vector<8x32xf32>
    %355 = vector.extract_strided_slice %313 {offsets = [0, 32], sizes = [8, 32], strides = [1, 1]} : vector<8x96xf32> to vector<8x32xf32>
    %356 = arith.addf %354, %355 : vector<8x32xf32>
    %357 = arith.negf %356 : vector<8x32xf32>
    %358 = math.exp %357 : vector<8x32xf32>
    %cst_104 = arith.constant 1.000000e+00 : f32
    %359 = vector.broadcast %cst_104 : f32 to vector<8x32xf32>
    %360 = arith.addf %359, %358 : vector<8x32xf32>
    %361 = arith.divf %359, %360 : vector<8x32xf32>
    %362 = vector.extract_strided_slice %345 {offsets = [0, 64], sizes = [8, 32], strides = [1, 1]} : vector<8x96xf32> to vector<8x32xf32>
    %363 = vector.extract_strided_slice %313 {offsets = [0, 64], sizes = [8, 32], strides = [1, 1]} : vector<8x96xf32> to vector<8x32xf32>
    %364 = arith.mulf %353, %363 : vector<8x32xf32>
    %365 = arith.addf %362, %364 : vector<8x32xf32>
    %366 = math.tanh %365 : vector<8x32xf32>
    %cst_105 = arith.constant 1.000000e+00 : f32
    %367 = vector.broadcast %cst_105 : f32 to vector<8x32xf32>
    %368 = arith.subf %367, %361 : vector<8x32xf32>
    %369 = arith.mulf %368, %366 : vector<8x32xf32>
    %370 = arith.mulf %361, %300 : vector<8x32xf32>
    %371 = arith.addf %369, %370 : vector<8x32xf32>
    %372 = arith.index_cast %c4_i32 : i32 to index
    %c0_106 = arith.constant 0 : index
    %c0_107 = arith.constant 0 : index
    %373 = vector.load %arg10[%372, %c0_106, %c0_107] : memref<8x8x32xf32, #tpu.memory_space<vmem>>, vector<1x8x32xf32>
    %374 = vector.shape_cast %373 : vector<1x8x32xf32> to vector<8x32xf32>
    %375 = vector.shape_cast %342 : vector<8x32xf32> to vector<1x8x32xf32>
    tpu.vector_store %arg10[%372, %c0_106, %c0_107], %375 {strides = array<i32>} : memref<8x8x32xf32, #tpu.memory_space<vmem>>, vector<1x8x32xf32>,
    %376 = arith.index_cast %309 : i32 to index
    %c0_108 = arith.constant 0 : index
    %c0_109 = arith.constant 0 : index
    %377 = vector.load %arg11[%376, %c0_108, %c0_109] : memref<8x8x32xf32, #tpu.memory_space<vmem>>, vector<1x8x32xf32>
    %378 = vector.shape_cast %377 : vector<1x8x32xf32> to vector<8x32xf32>
    %379 = vector.shape_cast %371 : vector<8x32xf32> to vector<1x8x32xf32>
    tpu.vector_store %arg11[%376, %c0_108, %c0_109], %379 {strides = array<i32>} : memref<8x8x32xf32, #tpu.memory_space<vmem>>, vector<1x8x32xf32>,
    %c5_i32 = arith.constant 5 : i32
    %c7_i32_110 = arith.constant 7 : i32
    %380 = arith.subi %c7_i32_110, %c5_i32 : i32
    %cst_111 = arith.constant dense<0.000000e+00> : vector<8x96xf32>
    %381 = tpu.matmul %342, %1, %cst_111 {dimension_numbers = #tpu.dot_dimension_numbers<[1], [0], [0], [1], [0, 0, 1, 1], [], []>} : vector<8x32xf32>, vector<32x96xf32>, vector<8x96xf32> -> vector<8x96xf32>
    %382 = arith.addf %381, %8 : vector<8x96xf32>
    %cst_112 = arith.constant dense<0.000000e+00> : vector<8x96xf32>
    %383 = tpu.matmul %371, %3, %cst_112 {dimension_numbers = #tpu.dot_dimension_numbers<[1], [0], [0], [1], [0, 0, 1, 1], [], []>} : vector<8x32xf32>, vector<32x96xf32>, vector<8x96xf32> -> vector<8x96xf32>
    %384 = arith.addf %383, %11 : vector<8x96xf32>
    %385 = arith.index_cast %c5_i32 : i32 to index
    %c0_113 = arith.constant 0 : index
    %c0_114 = arith.constant 0 : index
    %386 = vector.load %arg12[%385, %c0_113, %c0_114] : memref<8x8x96xf32, #tpu.memory_space<vmem>>, vector<1x8x96xf32>
    %387 = vector.shape_cast %386 : vector<1x8x96xf32> to vector<8x96xf32>
    %388 = vector.extract_strided_slice %387 {offsets = [0, 0], sizes = [8, 32], strides = [1, 1]} : vector<8x96xf32> to vector<8x32xf32>
    %389 = vector.extract_strided_slice %382 {offsets = [0, 0], sizes = [8, 32], strides = [1, 1]} : vector<8x96xf32> to vector<8x32xf32>
    %390 = arith.addf %388, %389 : vector<8x32xf32>
    %391 = arith.negf %390 : vector<8x32xf32>
    %392 = math.exp %391 : vector<8x32xf32>
    %cst_115 = arith.constant 1.000000e+00 : f32
    %393 = vector.broadcast %cst_115 : f32 to vector<8x32xf32>
    %394 = arith.addf %393, %392 : vector<8x32xf32>
    %395 = arith.divf %393, %394 : vector<8x32xf32>
    %396 = vector.extract_strided_slice %387 {offsets = [0, 32], sizes = [8, 32], strides = [1, 1]} : vector<8x96xf32> to vector<8x32xf32>
    %397 = vector.extract_strided_slice %382 {offsets = [0, 32], sizes = [8, 32], strides = [1, 1]} : vector<8x96xf32> to vector<8x32xf32>
    %398 = arith.addf %396, %397 : vector<8x32xf32>
    %399 = arith.negf %398 : vector<8x32xf32>
    %400 = math.exp %399 : vector<8x32xf32>
    %cst_116 = arith.constant 1.000000e+00 : f32
    %401 = vector.broadcast %cst_116 : f32 to vector<8x32xf32>
    %402 = arith.addf %401, %400 : vector<8x32xf32>
    %403 = arith.divf %401, %402 : vector<8x32xf32>
    %404 = vector.extract_strided_slice %387 {offsets = [0, 64], sizes = [8, 32], strides = [1, 1]} : vector<8x96xf32> to vector<8x32xf32>
    %405 = vector.extract_strided_slice %382 {offsets = [0, 64], sizes = [8, 32], strides = [1, 1]} : vector<8x96xf32> to vector<8x32xf32>
    %406 = arith.mulf %395, %405 : vector<8x32xf32>
    %407 = arith.addf %404, %406 : vector<8x32xf32>
    %408 = math.tanh %407 : vector<8x32xf32>
    %cst_117 = arith.constant 1.000000e+00 : f32
    %409 = vector.broadcast %cst_117 : f32 to vector<8x32xf32>
    %410 = arith.subf %409, %403 : vector<8x32xf32>
    %411 = arith.mulf %410, %408 : vector<8x32xf32>
    %412 = arith.mulf %403, %342 : vector<8x32xf32>
    %413 = arith.addf %411, %412 : vector<8x32xf32>
    %414 = arith.index_cast %380 : i32 to index
    %c0_118 = arith.constant 0 : index
    %c0_119 = arith.constant 0 : index
    %415 = vector.load %arg13[%414, %c0_118, %c0_119] : memref<8x8x96xf32, #tpu.memory_space<vmem>>, vector<1x8x96xf32>
    %416 = vector.shape_cast %415 : vector<1x8x96xf32> to vector<8x96xf32>
    %417 = vector.extract_strided_slice %416 {offsets = [0, 0], sizes = [8, 32], strides = [1, 1]} : vector<8x96xf32> to vector<8x32xf32>
    %418 = vector.extract_strided_slice %384 {offsets = [0, 0], sizes = [8, 32], strides = [1, 1]} : vector<8x96xf32> to vector<8x32xf32>
    %419 = arith.addf %417, %418 : vector<8x32xf32>
    %420 = arith.negf %419 : vector<8x32xf32>
    %421 = math.exp %420 : vector<8x32xf32>
    %cst_120 = arith.constant 1.000000e+00 : f32
    %422 = vector.broadcast %cst_120 : f32 to vector<8x32xf32>
    %423 = arith.addf %422, %421 : vector<8x32xf32>
    %424 = arith.divf %422, %423 : vector<8x32xf32>
    %425 = vector.extract_strided_slice %416 {offsets = [0, 32], sizes = [8, 32], strides = [1, 1]} : vector<8x96xf32> to vector<8x32xf32>
    %426 = vector.extract_strided_slice %384 {offsets = [0, 32], sizes = [8, 32], strides = [1, 1]} : vector<8x96xf32> to vector<8x32xf32>
    %427 = arith.addf %425, %426 : vector<8x32xf32>
    %428 = arith.negf %427 : vector<8x32xf32>
    %429 = math.exp %428 : vector<8x32xf32>
    %cst_121 = arith.constant 1.000000e+00 : f32
    %430 = vector.broadcast %cst_121 : f32 to vector<8x32xf32>
    %431 = arith.addf %430, %429 : vector<8x32xf32>
    %432 = arith.divf %430, %431 : vector<8x32xf32>
    %433 = vector.extract_strided_slice %416 {offsets = [0, 64], sizes = [8, 32], strides = [1, 1]} : vector<8x96xf32> to vector<8x32xf32>
    %434 = vector.extract_strided_slice %384 {offsets = [0, 64], sizes = [8, 32], strides = [1, 1]} : vector<8x96xf32> to vector<8x32xf32>
    %435 = arith.mulf %424, %434 : vector<8x32xf32>
    %436 = arith.addf %433, %435 : vector<8x32xf32>
    %437 = math.tanh %436 : vector<8x32xf32>
    %cst_122 = arith.constant 1.000000e+00 : f32
    %438 = vector.broadcast %cst_122 : f32 to vector<8x32xf32>
    %439 = arith.subf %438, %432 : vector<8x32xf32>
    %440 = arith.mulf %439, %437 : vector<8x32xf32>
    %441 = arith.mulf %432, %371 : vector<8x32xf32>
    %442 = arith.addf %440, %441 : vector<8x32xf32>
    %443 = arith.index_cast %c5_i32 : i32 to index
    %c0_123 = arith.constant 0 : index
    %c0_124 = arith.constant 0 : index
    %444 = vector.load %arg10[%443, %c0_123, %c0_124] : memref<8x8x32xf32, #tpu.memory_space<vmem>>, vector<1x8x32xf32>
    %445 = vector.shape_cast %444 : vector<1x8x32xf32> to vector<8x32xf32>
    %446 = vector.shape_cast %413 : vector<8x32xf32> to vector<1x8x32xf32>
    tpu.vector_store %arg10[%443, %c0_123, %c0_124], %446 {strides = array<i32>} : memref<8x8x32xf32, #tpu.memory_space<vmem>>, vector<1x8x32xf32>,
    %447 = arith.index_cast %380 : i32 to index
    %c0_125 = arith.constant 0 : index
    %c0_126 = arith.constant 0 : index
    %448 = vector.load %arg11[%447, %c0_125, %c0_126] : memref<8x8x32xf32, #tpu.memory_space<vmem>>, vector<1x8x32xf32>
    %449 = vector.shape_cast %448 : vector<1x8x32xf32> to vector<8x32xf32>
    %450 = vector.shape_cast %442 : vector<8x32xf32> to vector<1x8x32xf32>
    tpu.vector_store %arg11[%447, %c0_125, %c0_126], %450 {strides = array<i32>} : memref<8x8x32xf32, #tpu.memory_space<vmem>>, vector<1x8x32xf32>,
    %c6_i32 = arith.constant 6 : i32
    %c7_i32_127 = arith.constant 7 : i32
    %451 = arith.subi %c7_i32_127, %c6_i32 : i32
    %cst_128 = arith.constant dense<0.000000e+00> : vector<8x96xf32>
    %452 = tpu.matmul %413, %1, %cst_128 {dimension_numbers = #tpu.dot_dimension_numbers<[1], [0], [0], [1], [0, 0, 1, 1], [], []>} : vector<8x32xf32>, vector<32x96xf32>, vector<8x96xf32> -> vector<8x96xf32>
    %453 = arith.addf %452, %8 : vector<8x96xf32>
    %cst_129 = arith.constant dense<0.000000e+00> : vector<8x96xf32>
    %454 = tpu.matmul %442, %3, %cst_129 {dimension_numbers = #tpu.dot_dimension_numbers<[1], [0], [0], [1], [0, 0, 1, 1], [], []>} : vector<8x32xf32>, vector<32x96xf32>, vector<8x96xf32> -> vector<8x96xf32>
    %455 = arith.addf %454, %11 : vector<8x96xf32>
    %456 = arith.index_cast %c6_i32 : i32 to index
    %c0_130 = arith.constant 0 : index
    %c0_131 = arith.constant 0 : index
    %457 = vector.load %arg12[%456, %c0_130, %c0_131] : memref<8x8x96xf32, #tpu.memory_space<vmem>>, vector<1x8x96xf32>
    %458 = vector.shape_cast %457 : vector<1x8x96xf32> to vector<8x96xf32>
    %459 = vector.extract_strided_slice %458 {offsets = [0, 0], sizes = [8, 32], strides = [1, 1]} : vector<8x96xf32> to vector<8x32xf32>
    %460 = vector.extract_strided_slice %453 {offsets = [0, 0], sizes = [8, 32], strides = [1, 1]} : vector<8x96xf32> to vector<8x32xf32>
    %461 = arith.addf %459, %460 : vector<8x32xf32>
    %462 = arith.negf %461 : vector<8x32xf32>
    %463 = math.exp %462 : vector<8x32xf32>
    %cst_132 = arith.constant 1.000000e+00 : f32
    %464 = vector.broadcast %cst_132 : f32 to vector<8x32xf32>
    %465 = arith.addf %464, %463 : vector<8x32xf32>
    %466 = arith.divf %464, %465 : vector<8x32xf32>
    %467 = vector.extract_strided_slice %458 {offsets = [0, 32], sizes = [8, 32], strides = [1, 1]} : vector<8x96xf32> to vector<8x32xf32>
    %468 = vector.extract_strided_slice %453 {offsets = [0, 32], sizes = [8, 32], strides = [1, 1]} : vector<8x96xf32> to vector<8x32xf32>
    %469 = arith.addf %467, %468 : vector<8x32xf32>
    %470 = arith.negf %469 : vector<8x32xf32>
    %471 = math.exp %470 : vector<8x32xf32>
    %cst_133 = arith.constant 1.000000e+00 : f32
    %472 = vector.broadcast %cst_133 : f32 to vector<8x32xf32>
    %473 = arith.addf %472, %471 : vector<8x32xf32>
    %474 = arith.divf %472, %473 : vector<8x32xf32>
    %475 = vector.extract_strided_slice %458 {offsets = [0, 64], sizes = [8, 32], strides = [1, 1]} : vector<8x96xf32> to vector<8x32xf32>
    %476 = vector.extract_strided_slice %453 {offsets = [0, 64], sizes = [8, 32], strides = [1, 1]} : vector<8x96xf32> to vector<8x32xf32>
    %477 = arith.mulf %466, %476 : vector<8x32xf32>
    %478 = arith.addf %475, %477 : vector<8x32xf32>
    %479 = math.tanh %478 : vector<8x32xf32>
    %cst_134 = arith.constant 1.000000e+00 : f32
    %480 = vector.broadcast %cst_134 : f32 to vector<8x32xf32>
    %481 = arith.subf %480, %474 : vector<8x32xf32>
    %482 = arith.mulf %481, %479 : vector<8x32xf32>
    %483 = arith.mulf %474, %413 : vector<8x32xf32>
    %484 = arith.addf %482, %483 : vector<8x32xf32>
    %485 = arith.index_cast %451 : i32 to index
    %c0_135 = arith.constant 0 : index
    %c0_136 = arith.constant 0 : index
    %486 = vector.load %arg13[%485, %c0_135, %c0_136] : memref<8x8x96xf32, #tpu.memory_space<vmem>>, vector<1x8x96xf32>
    %487 = vector.shape_cast %486 : vector<1x8x96xf32> to vector<8x96xf32>
    %488 = vector.extract_strided_slice %487 {offsets = [0, 0], sizes = [8, 32], strides = [1, 1]} : vector<8x96xf32> to vector<8x32xf32>
    %489 = vector.extract_strided_slice %455 {offsets = [0, 0], sizes = [8, 32], strides = [1, 1]} : vector<8x96xf32> to vector<8x32xf32>
    %490 = arith.addf %488, %489 : vector<8x32xf32>
    %491 = arith.negf %490 : vector<8x32xf32>
    %492 = math.exp %491 : vector<8x32xf32>
    %cst_137 = arith.constant 1.000000e+00 : f32
    %493 = vector.broadcast %cst_137 : f32 to vector<8x32xf32>
    %494 = arith.addf %493, %492 : vector<8x32xf32>
    %495 = arith.divf %493, %494 : vector<8x32xf32>
    %496 = vector.extract_strided_slice %487 {offsets = [0, 32], sizes = [8, 32], strides = [1, 1]} : vector<8x96xf32> to vector<8x32xf32>
    %497 = vector.extract_strided_slice %455 {offsets = [0, 32], sizes = [8, 32], strides = [1, 1]} : vector<8x96xf32> to vector<8x32xf32>
    %498 = arith.addf %496, %497 : vector<8x32xf32>
    %499 = arith.negf %498 : vector<8x32xf32>
    %500 = math.exp %499 : vector<8x32xf32>
    %cst_138 = arith.constant 1.000000e+00 : f32
    %501 = vector.broadcast %cst_138 : f32 to vector<8x32xf32>
    %502 = arith.addf %501, %500 : vector<8x32xf32>
    %503 = arith.divf %501, %502 : vector<8x32xf32>
    %504 = vector.extract_strided_slice %487 {offsets = [0, 64], sizes = [8, 32], strides = [1, 1]} : vector<8x96xf32> to vector<8x32xf32>
    %505 = vector.extract_strided_slice %455 {offsets = [0, 64], sizes = [8, 32], strides = [1, 1]} : vector<8x96xf32> to vector<8x32xf32>
    %506 = arith.mulf %495, %505 : vector<8x32xf32>
    %507 = arith.addf %504, %506 : vector<8x32xf32>
    %508 = math.tanh %507 : vector<8x32xf32>
    %cst_139 = arith.constant 1.000000e+00 : f32
    %509 = vector.broadcast %cst_139 : f32 to vector<8x32xf32>
    %510 = arith.subf %509, %503 : vector<8x32xf32>
    %511 = arith.mulf %510, %508 : vector<8x32xf32>
    %512 = arith.mulf %503, %442 : vector<8x32xf32>
    %513 = arith.addf %511, %512 : vector<8x32xf32>
    %514 = arith.index_cast %c6_i32 : i32 to index
    %c0_140 = arith.constant 0 : index
    %c0_141 = arith.constant 0 : index
    %515 = vector.load %arg10[%514, %c0_140, %c0_141] : memref<8x8x32xf32, #tpu.memory_space<vmem>>, vector<1x8x32xf32>
    %516 = vector.shape_cast %515 : vector<1x8x32xf32> to vector<8x32xf32>
    %517 = vector.shape_cast %484 : vector<8x32xf32> to vector<1x8x32xf32>
    tpu.vector_store %arg10[%514, %c0_140, %c0_141], %517 {strides = array<i32>} : memref<8x8x32xf32, #tpu.memory_space<vmem>>, vector<1x8x32xf32>,
    %518 = arith.index_cast %451 : i32 to index
    %c0_142 = arith.constant 0 : index
    %c0_143 = arith.constant 0 : index
    %519 = vector.load %arg11[%518, %c0_142, %c0_143] : memref<8x8x32xf32, #tpu.memory_space<vmem>>, vector<1x8x32xf32>
    %520 = vector.shape_cast %519 : vector<1x8x32xf32> to vector<8x32xf32>
    %521 = vector.shape_cast %513 : vector<8x32xf32> to vector<1x8x32xf32>
    tpu.vector_store %arg11[%518, %c0_142, %c0_143], %521 {strides = array<i32>} : memref<8x8x32xf32, #tpu.memory_space<vmem>>, vector<1x8x32xf32>,
    %c7_i32_144 = arith.constant 7 : i32
    %c7_i32_145 = arith.constant 7 : i32
    %522 = arith.subi %c7_i32_145, %c7_i32_144 : i32
    %cst_146 = arith.constant dense<0.000000e+00> : vector<8x96xf32>
    %523 = tpu.matmul %484, %1, %cst_146 {dimension_numbers = #tpu.dot_dimension_numbers<[1], [0], [0], [1], [0, 0, 1, 1], [], []>} : vector<8x32xf32>, vector<32x96xf32>, vector<8x96xf32> -> vector<8x96xf32>
    %524 = arith.addf %523, %8 : vector<8x96xf32>
    %cst_147 = arith.constant dense<0.000000e+00> : vector<8x96xf32>
    %525 = tpu.matmul %513, %3, %cst_147 {dimension_numbers = #tpu.dot_dimension_numbers<[1], [0], [0], [1], [0, 0, 1, 1], [], []>} : vector<8x32xf32>, vector<32x96xf32>, vector<8x96xf32> -> vector<8x96xf32>
    %526 = arith.addf %525, %11 : vector<8x96xf32>
    %527 = arith.index_cast %c7_i32_144 : i32 to index
    %c0_148 = arith.constant 0 : index
    %c0_149 = arith.constant 0 : index
    %528 = vector.load %arg12[%527, %c0_148, %c0_149] : memref<8x8x96xf32, #tpu.memory_space<vmem>>, vector<1x8x96xf32>
    %529 = vector.shape_cast %528 : vector<1x8x96xf32> to vector<8x96xf32>
    %530 = vector.extract_strided_slice %529 {offsets = [0, 0], sizes = [8, 32], strides = [1, 1]} : vector<8x96xf32> to vector<8x32xf32>
    %531 = vector.extract_strided_slice %524 {offsets = [0, 0], sizes = [8, 32], strides = [1, 1]} : vector<8x96xf32> to vector<8x32xf32>
    %532 = arith.addf %530, %531 : vector<8x32xf32>
    %533 = arith.negf %532 : vector<8x32xf32>
    %534 = math.exp %533 : vector<8x32xf32>
    %cst_150 = arith.constant 1.000000e+00 : f32
    %535 = vector.broadcast %cst_150 : f32 to vector<8x32xf32>
    %536 = arith.addf %535, %534 : vector<8x32xf32>
    %537 = arith.divf %535, %536 : vector<8x32xf32>
    %538 = vector.extract_strided_slice %529 {offsets = [0, 32], sizes = [8, 32], strides = [1, 1]} : vector<8x96xf32> to vector<8x32xf32>
    %539 = vector.extract_strided_slice %524 {offsets = [0, 32], sizes = [8, 32], strides = [1, 1]} : vector<8x96xf32> to vector<8x32xf32>
    %540 = arith.addf %538, %539 : vector<8x32xf32>
    %541 = arith.negf %540 : vector<8x32xf32>
    %542 = math.exp %541 : vector<8x32xf32>
    %cst_151 = arith.constant 1.000000e+00 : f32
    %543 = vector.broadcast %cst_151 : f32 to vector<8x32xf32>
    %544 = arith.addf %543, %542 : vector<8x32xf32>
    %545 = arith.divf %543, %544 : vector<8x32xf32>
    %546 = vector.extract_strided_slice %529 {offsets = [0, 64], sizes = [8, 32], strides = [1, 1]} : vector<8x96xf32> to vector<8x32xf32>
    %547 = vector.extract_strided_slice %524 {offsets = [0, 64], sizes = [8, 32], strides = [1, 1]} : vector<8x96xf32> to vector<8x32xf32>
    %548 = arith.mulf %537, %547 : vector<8x32xf32>
    %549 = arith.addf %546, %548 : vector<8x32xf32>
    %550 = math.tanh %549 : vector<8x32xf32>
    %cst_152 = arith.constant 1.000000e+00 : f32
    %551 = vector.broadcast %cst_152 : f32 to vector<8x32xf32>
    %552 = arith.subf %551, %545 : vector<8x32xf32>
    %553 = arith.mulf %552, %550 : vector<8x32xf32>
    %554 = arith.mulf %545, %484 : vector<8x32xf32>
    %555 = arith.addf %553, %554 : vector<8x32xf32>
    %556 = arith.index_cast %522 : i32 to index
    %c0_153 = arith.constant 0 : index
    %c0_154 = arith.constant 0 : index
    %557 = vector.load %arg13[%556, %c0_153, %c0_154] : memref<8x8x96xf32, #tpu.memory_space<vmem>>, vector<1x8x96xf32>
    %558 = vector.shape_cast %557 : vector<1x8x96xf32> to vector<8x96xf32>
    %559 = vector.extract_strided_slice %558 {offsets = [0, 0], sizes = [8, 32], strides = [1, 1]} : vector<8x96xf32> to vector<8x32xf32>
    %560 = vector.extract_strided_slice %526 {offsets = [0, 0], sizes = [8, 32], strides = [1, 1]} : vector<8x96xf32> to vector<8x32xf32>
    %561 = arith.addf %559, %560 : vector<8x32xf32>
    %562 = arith.negf %561 : vector<8x32xf32>
    %563 = math.exp %562 : vector<8x32xf32>
    %cst_155 = arith.constant 1.000000e+00 : f32
    %564 = vector.broadcast %cst_155 : f32 to vector<8x32xf32>
    %565 = arith.addf %564, %563 : vector<8x32xf32>
    %566 = arith.divf %564, %565 : vector<8x32xf32>
    %567 = vector.extract_strided_slice %558 {offsets = [0, 32], sizes = [8, 32], strides = [1, 1]} : vector<8x96xf32> to vector<8x32xf32>
    %568 = vector.extract_strided_slice %526 {offsets = [0, 32], sizes = [8, 32], strides = [1, 1]} : vector<8x96xf32> to vector<8x32xf32>
    %569 = arith.addf %567, %568 : vector<8x32xf32>
    %570 = arith.negf %569 : vector<8x32xf32>
    %571 = math.exp %570 : vector<8x32xf32>
    %cst_156 = arith.constant 1.000000e+00 : f32
    %572 = vector.broadcast %cst_156 : f32 to vector<8x32xf32>
    %573 = arith.addf %572, %571 : vector<8x32xf32>
    %574 = arith.divf %572, %573 : vector<8x32xf32>
    %575 = vector.extract_strided_slice %558 {offsets = [0, 64], sizes = [8, 32], strides = [1, 1]} : vector<8x96xf32> to vector<8x32xf32>
    %576 = vector.extract_strided_slice %526 {offsets = [0, 64], sizes = [8, 32], strides = [1, 1]} : vector<8x96xf32> to vector<8x32xf32>
    %577 = arith.mulf %566, %576 : vector<8x32xf32>
    %578 = arith.addf %575, %577 : vector<8x32xf32>
    %579 = math.tanh %578 : vector<8x32xf32>
    %cst_157 = arith.constant 1.000000e+00 : f32
    %580 = vector.broadcast %cst_157 : f32 to vector<8x32xf32>
    %581 = arith.subf %580, %574 : vector<8x32xf32>
    %582 = arith.mulf %581, %579 : vector<8x32xf32>
    %583 = arith.mulf %574, %513 : vector<8x32xf32>
    %584 = arith.addf %582, %583 : vector<8x32xf32>
    %585 = arith.index_cast %c7_i32_144 : i32 to index
    %c0_158 = arith.constant 0 : index
    %c0_159 = arith.constant 0 : index
    %586 = vector.load %arg10[%585, %c0_158, %c0_159] : memref<8x8x32xf32, #tpu.memory_space<vmem>>, vector<1x8x32xf32>
    %587 = vector.shape_cast %586 : vector<1x8x32xf32> to vector<8x32xf32>
    %588 = vector.shape_cast %555 : vector<8x32xf32> to vector<1x8x32xf32>
    tpu.vector_store %arg10[%585, %c0_158, %c0_159], %588 {strides = array<i32>} : memref<8x8x32xf32, #tpu.memory_space<vmem>>, vector<1x8x32xf32>,
    %589 = arith.index_cast %522 : i32 to index
    %c0_160 = arith.constant 0 : index
    %c0_161 = arith.constant 0 : index
    %590 = vector.load %arg11[%589, %c0_160, %c0_161] : memref<8x8x32xf32, #tpu.memory_space<vmem>>, vector<1x8x32xf32>
    %591 = vector.shape_cast %590 : vector<1x8x32xf32> to vector<8x32xf32>
    %592 = vector.shape_cast %584 : vector<8x32xf32> to vector<1x8x32xf32>
    tpu.vector_store %arg11[%589, %c0_160, %c0_161], %592 {strides = array<i32>} : memref<8x8x32xf32, #tpu.memory_space<vmem>>, vector<1x8x32xf32>,
    %c8_i32 = arith.constant 8 : i32
    return
  }
  func.func @transform_0(%arg0: i32) -> (i32, i32, i32) {
    %c0_i32 = arith.constant 0 : i32
    %c0_i32_0 = arith.constant 0 : i32
    %c0_i32_1 = arith.constant 0 : i32
    return %c0_i32, %arg0, %c0_i32_0 : i32, i32, i32
  }
  func.func @transform_1(%arg0: i32) -> (i32, i32) {
    %c0_i32 = arith.constant 0 : i32
    %c0_i32_0 = arith.constant 0 : i32
    %c0_i32_1 = arith.constant 0 : i32
    return %c0_i32, %c0_i32_0 : i32, i32
  }
  func.func @transform_2(%arg0: i32) -> (i32, i32) {
    %c0_i32 = arith.constant 0 : i32
    %c0_i32_0 = arith.constant 0 : i32
    %c0_i32_1 = arith.constant 0 : i32
    return %c0_i32, %c0_i32_0 : i32, i32
  }
  func.func @transform_3(%arg0: i32) -> (i32, i32) {
    %c0_i32 = arith.constant 0 : i32
    %c0_i32_0 = arith.constant 0 : i32
    %c0_i32_1 = arith.constant 0 : i32
    return %c0_i32, %c0_i32_0 : i32, i32
  }
  func.func @transform_4(%arg0: i32) -> (i32, i32) {
    %c0_i32 = arith.constant 0 : i32
    %c0_i32_0 = arith.constant 0 : i32
    %c0_i32_1 = arith.constant 0 : i32
    return %c0_i32, %c0_i32_0 : i32, i32
  }
  func.func @transform_5(%arg0: i32) -> (i32, i32) {
    %c0_i32 = arith.constant 0 : i32
    %c0_i32_0 = arith.constant 0 : i32
    %c0_i32_1 = arith.constant 0 : i32
    return %c0_i32, %c0_i32_0 : i32, i32
  }
  func.func @transform_6(%arg0: i32) -> (i32, i32) {
    %c0_i32 = arith.constant 0 : i32
    %c0_i32_0 = arith.constant 0 : i32
    %c0_i32_1 = arith.constant 0 : i32
    return %c0_i32, %c0_i32_0 : i32, i32
  }
  func.func @transform_7(%arg0: i32) -> (i32, i32) {
    %c0_i32 = arith.constant 0 : i32
    %c0_i32_0 = arith.constant 0 : i32
    %c0_i32_1 = arith.constant 0 : i32
    return %c0_i32, %c0_i32_0 : i32, i32
  }
  func.func @transform_8(%arg0: i32) -> (i32, i32) {
    %c0_i32 = arith.constant 0 : i32
    %c0_i32_0 = arith.constant 0 : i32
    %c0_i32_1 = arith.constant 0 : i32
    return %c0_i32, %c0_i32_0 : i32, i32
  }
  func.func @transform_9(%arg0: i32) -> (i32, i32, i32) {
    %c0_i32 = arith.constant 0 : i32
    %c0_i32_0 = arith.constant 0 : i32
    %c0_i32_1 = arith.constant 0 : i32
    return %c0_i32, %arg0, %c0_i32_0 : i32, i32, i32
  }
  func.func @transform_10(%arg0: i32) -> (i32, i32, i32) {
    %c0_i32 = arith.constant 0 : i32
    %c0_i32_0 = arith.constant 0 : i32
    %c0_i32_1 = arith.constant 0 : i32
    return %c0_i32, %arg0, %c0_i32_0 : i32, i32, i32
  }
}

</mosaic_0001>

<bundles_post_ra>
// kernel: tpu_custom_call.1
= control target key start
LH: loop header
LB: loop body
LE: loop exit
PB: predicated region body
PF: predicated region fallthrough
CT: control target
= control target key end

     0   :  { %16 = vsyncpa [#allocation5], 0  ;;  %s3248_s0 = inlined_call_operand.hbm [shape: f32[8,8,16], index: 0, kind: input, shape index: {}]   ;;  %s3249_s1 = inlined_call_operand.hbm [shape: f32[16,96], index: 1, kind: input, shape index: {}]   ;;  %s3250_s2 = inlined_call_operand.hbm [shape: f32[32,96], index: 2, kind: input, shape index: {}]   ;;  %s3251_s3 = inlined_call_operand.vmem [shape: f32[1,96], index: 3, kind: input, shape index: {}]   ;;  %s3252_s4 = inlined_call_operand.vmem [shape: f32[1,96], index: 4, kind: input, shape index: {}]   ;;  %s3253_s5 = inlined_call_operand.hbm [shape: f32[16,96], index: 5, kind: input, shape index: {}]   ;;  %s3254_s6 = inlined_call_operand.hbm [shape: f32[32,96], index: 6, kind: input, shape index: {}]   ;;  %s3255_s7 = inlined_call_operand.vmem [shape: f32[1,96], index: 7, kind: input, shape index: {}]   ;;  %s3256_s8 = inlined_call_operand.vmem [shape: f32[1,96], index: 8, kind: input, shape index: {}]   ;;  %s3257_s9 = inlined_call_operand.hbm [shape: f32[8,8,32], index: 9, kind: output, shape index: {0}]   ;;  %s3258_s10 = inlined_call_operand.hbm [shape: f32[8,8,32], index: 10, kind: output, shape index: {1}]  }
   0x1   :  { %17 = vsyncpa [#allocation8], 0 }
   0x2   :  { %18 = vsyncpa [#allocation11], 0 }
   0x3   :  { %19 = vsyncpa [#allocation6], 0 }
   0x4   :  { %20 = vsyncpa [#allocation15], 0  ;;  %s2758_s13 = smov [#allocation7]   ;;  %s2759_s15 = smov [#allocation10]  }
   0x5   :  { %s38_s14 = sshll.u32 %s2758_s13, 4  ;;  %s66_s16 = sshll.u32 %s2759_s15, 4  ;;  %s39_s14 = int_to_ptr.vmem [resolvable:$true] %s38_s14  ;;  %s67_s16 = int_to_ptr.vmem [resolvable:$true] %s66_s16 }
   0x6   :  { %s2616_s17 = scalar_lea.vmem %s39_s14, 256  ;;  %p2621_p1 = scmp.lt.s32.totalorder %s39_s14, %s39_s14 }
   0x7   :  { %p2617_p0 = scmp.ne.s32.totalorder %s39_s14, %s2616_s17  ;;  %p2622_p2 = scmp.lt.s32.totalorder %s2616_s17, %s2616_s17 }
   0x9   :  { %p2623_p3 = por %p2622_p2, %p2621_p1 }
   0xb   :  { %p2624_p4 = pnand %p2623_p3, %p2617_p0 }
   0xd   :  { %2627 = shalt.err (!%p2624_p4)
}
   0xe   :  { %s2760_s18 = smov 128   ;;  %s2761_s19 = smov 8  }
   0xf   :  { %44 = dma.hbm_to_vmem [thread:$0]  %s3249_s1, 256, %s39_s14, [#allocation8], %s2760_s18, %s2760_s18, %s2761_s19  }
  0x10   :  { %s2636_s22 = scalar_lea.vmem %s67_s16, 256  ;;  %p2641_p6 = scmp.lt.s32.totalorder %s67_s16, %s67_s16 }
  0x11   :  { %p2637_p5 = scmp.ne.s32.totalorder %s67_s16, %s2636_s22  ;;  %p2642_p7 = scmp.lt.s32.totalorder %s2636_s22, %s2636_s22 }
  0x13   :  { %p2643_p8 = por %p2642_p7, %p2641_p6 }
  0x15   :  { %p2644_p9 = pnand %p2643_p8, %p2637_p5 }
  0x17   :  { %2647 = shalt.err (!%p2644_p9)
}
  0x18   :  { %72 = dma.hbm_to_vmem [thread:$0]  %s3253_s5, 256, %s67_s16, [#allocation11], %s2760_s18, %s2760_s18, %s2761_s19  }
  0x19   :  { %s2762_s25 = smov [#allocation4]   ;;  %s2763_s27 = smov [#allocation9]  }
  0x1a   :  { %s26_s26 = sshll.u32 %s2762_s25, 4  ;;  %s50_s28 = sshll.u32 %s2763_s27, 4  ;;  %s27_s26 = int_to_ptr.vmem [resolvable:$true] %s26_s26  ;;  %s51_s28 = int_to_ptr.vmem [resolvable:$true] %s50_s28 }
  0x1b   :  { %s2656_s1 = scalar_lea.vmem %s27_s26, 1024  ;;  %p2661_p11 = scmp.lt.s32.totalorder %s27_s26, %s27_s26 }
  0x1c   :  { %p2657_p10 = scmp.ne.s32.totalorder %s27_s26, %s2656_s1  ;;  %p2662_p12 = scmp.lt.s32.totalorder %s2656_s1, %s2656_s1 }
  0x1e   :  { %p2663_p13 = por %p2662_p12, %p2661_p11 }
  0x20   :  { %p2664_p0 = pnand %p2663_p13, %p2657_p10 }
  0x22   :  { %2667 = shalt.err (!%p2664_p0)
}
  0x23   :  { %32 = dma.hbm_to_vmem [thread:$0]  %s3248_s0, 1024, %s27_s26, [#allocation5], %s2760_s18, %s2760_s18, %s2761_s19  }
  0x24   :  { %s2676_s5 = scalar_lea.vmem %s51_s28, 512  ;;  %p2681_p2 = scmp.lt.s32.totalorder %s51_s28, %s51_s28 }
  0x25   :  { %p2677_p1 = scmp.ne.s32.totalorder %s51_s28, %s2676_s5  ;;  %p2682_p3 = scmp.lt.s32.totalorder %s2676_s5, %s2676_s5 }
  0x27   :  { %p2683_p4 = por %p2682_p3, %p2681_p2 }
  0x29   :  { %p2684_p5 = pnand %p2683_p4, %p2677_p1 }
  0x2b   :  { %2687 = shalt.err (!%p2684_p5)
}
  0x2c   :  { %56 = dma.hbm_to_vmem [thread:$0]  %s3250_s2, 512, %s51_s28, [#allocation8], %s2760_s18, %s2760_s18, %s2761_s19  }
  0x2d   :  { %s2764_s13 = smov [#allocation12]  }
  0x2e   :  { %s78_s14 = sshll.u32 %s2764_s13, 4  ;;  %s79_s14 = int_to_ptr.vmem [resolvable:$true] %s78_s14 }
  0x2f   :  { %s2696_s15 = scalar_lea.vmem %s79_s14, 512  ;;  %p2701_p7 = scmp.lt.s32.totalorder %s79_s14, %s79_s14 }
  0x30   :  { %p2697_p6 = scmp.ne.s32.totalorder %s79_s14, %s2696_s15  ;;  %p2702_p8 = scmp.lt.s32.totalorder %s2696_s15, %s2696_s15 }
  0x32   :  { %p2703_p9 = por %p2702_p8, %p2701_p7 }
  0x34   :  { %p2704_p10 = pnand %p2703_p9, %p2697_p6 }
  0x36   :  { %2707 = shalt.err (!%p2704_p10)
}
  0x37   :  { %84 = dma.hbm_to_vmem [thread:$0]  %s3254_s6, 512, %s79_s14, [#allocation11], %s2760_s18, %s2760_s18, %s2761_s19  }
  0x38   :  { %2748 = dma.done.wait [#allocation5], 1024  }
  0x39   :  { %2749 = vsyncadd [#allocation5], 4294966272 }
  0x3a   :  { %2750 = dma.done.wait [#allocation8], 768  }
  0x3b   :  { %2751 = vsyncadd [#allocation8], 4294966528 }
  0x3c   :  { %2752 = dma.done.wait [#allocation11], 768  }
  0x3d   :  { %2753 = vsyncadd [#allocation11], 4294966528  ;;  %v105_v0 = vld [vmem:[#allocation7 + $0x8] sm:$0xff]  ;;  %v111_v1 = vld [vmem:[#allocation10 + $0x8] sm:$0xff]  ;;  %vm146_vm0 = vcmask 130048   ;;  %v2765_v8 = vmov 0.0  }
  0x3e   :  { %v104_v2 = vld [vmem:[#allocation7] sm:$0xff]  ;;  %2281 = vmatprep.subr.mxu0 %v105_v0  ;;  %2297 = vmatprep.subr.mxu1 %v111_v1  ;;  %v110_v4 = vld [vmem:[#allocation10] sm:$0xff]  ;;  %v133_v5 = vld [vmem:[#allocation4 + $0x8] sm:$0xff]  ;;  %vm2766_vm1 = vmmov 0   ;;  %vm276_vm2 = vcmask 785408   ;;  %s2767_s23 = smov 64  }
  0x3f   :  { %v132_v3 = vld [vmem:[#allocation4] sm:$0xff]  ;;  %2282 = vmatpush3.msra.mxu0 %v105_v0  ;;  %2298 = vmatpush3.msra.mxu1 %v111_v1  ;;  %v2857_v6 = vld [vmem:[#allocation9 + $0x18] sm:$0xff]  ;;  %v134_v7 = vld [vmem:[#allocation4 + $0x10] sm:$0xff]  ;;  %s2768_s24 = smov 96   ;;  %vm404_vm3 = vcmask 261120   ;;  %s2770_s1 = smov [#allocation14]  }
  0x40   :  { %2283 = vmatprep.subr.mxu0 %v104_v2  ;;  %2285 = vmatprep.mubr.msk.f32.mxu0 %vm146_vm0, %v132_v3  ;;  %v135_v9 = vld [vmem:[#allocation4 + $0x18] sm:$0xff]  ;;  %v2864_v10 = vld [vmem:[#allocation9 + $0x10] sm:$0xff]  ;;  %v137_v13 = vld [vmem:[#allocation4 + $0x28] sm:$0xff]  ;;  %s2113_s29 = sshll.u32 %s2770_s1, 4  ;;  %s2114_s29 = int_to_ptr.vmem [resolvable:$true] %s2113_s29 }
  0x41   :  { %2284 = vmatpush3.msra.mxu0 %v104_v2  ;;  %2299 = vmatprep.subr.mxu1 %v110_v4  ;;  %v136_v11 = vld [vmem:[#allocation4 + $0x20] sm:$0xff]  ;;  %v2870_v12 = vld [vmem:[#allocation12 + $0x18] sm:$0xff]  ;;  %v138_v15 = vld [vmem:[#allocation4 + $0x30] sm:$0xff] }
  0x42   :  { %2286 = vmatmul.mubr.msk.f32.vlgmr.msra.gmra.mxu0 %vm146_vm0, %v133_v5  ;;  %2300 = vmatpush3.msra.mxu1 %v110_v4  ;;  %v2876_v14 = vld [vmem:[#allocation9 + $0x8] sm:$0xff]  ;;  %v2882_v16 = vld [vmem:[#allocation12 + $0x10] sm:$0xff]  ;;  %v2894_v19 = vld [vmem:[#allocation12 + $0x8] sm:$0xff] }
  0x43   :  { %2301 = vmatprep.mubr.msk.f32.mxu1 %vm146_vm0, %v132_v3  ;;  %2313 = vmatprep.subr.mxu0 %v2765_v8  ;;  %v139_v17 = vld [vmem:[#allocation4 + $0x38] sm:$0xff]  ;;  %v2888_v18 = vld [vmem:[#allocation9] sm:$0xff]  ;;  %v2901_v20 = vld [vmem:[#allocation12] sm:$0xff] }
  0x44   :  { %2302 = vmatmul.mubr.msk.f32.vlgmr.msra.gmra.mxu1 %vm146_vm0, %v133_v5  ;;  %2314 = vmatpush3.msra.mxu0 %v2857_v6  ;;  %v2133_v21 = vld [vmem:[%s3251_s3] ss:$0 sm:$0xff] }
  0x45   :  { %2288 = vmatprep.mubr.msk.f32.mxu0 %vm146_vm0, %v134_v7  ;;  %2304 = vmatprep.mubr.msk.f32.mxu1 %vm146_vm0, %v134_v7  ;;  %v2142_v23 = vld [vmem:[%s3255_s7] ss:$0 sm:$0xff] }
  0x46   :  { %2289 = vmatmul.mubr.msk.f32.gmra.mxu0 %vm146_vm0, %v135_v9  ;;  %2315 = vmatprep.subr.mxu0 %v2765_v8  ;;  %v2952_v51 = vld [vmem:[%s3252_s4] ss:$0 sm:$0xff] }
  0x47   :  { %2324 = vmatprep.subr.mxu1 %v2765_v8  ;;  %2316 = vmatpush3.msra.mxu0 %v2864_v10  ;;  %v2959_v56 = vld [vmem:[%s3256_s8] ss:$0 sm:$0xff] }
  0x48   :  { %2305 = vmatmul.mubr.msk.f32.gmra.mxu1 %vm146_vm0, %v135_v9  ;;  %2291 = vmatprep.mubr.msk.f32.mxu0 %vm146_vm0, %v136_v11 }
  0x49   :  { %2325 = vmatpush3.msra.mxu1 %v2870_v12  ;;  %2307 = vmatprep.mubr.msk.f32.mxu1 %vm146_vm0, %v136_v11 }
  0x4a   :  { %2292 = vmatmul.mubr.msk.f32.gmra.mxu0 %vm146_vm0, %v137_v13  ;;  %2317 = vmatprep.subr.mxu0 %v2765_v8 }
  0x4b   :  { %2326 = vmatprep.subr.mxu1 %v2765_v8  ;;  %2318 = vmatpush3.msra.mxu0 %v2876_v14 }
  0x4c   :  { %2308 = vmatmul.mubr.msk.f32.gmra.mxu1 %vm146_vm0, %v137_v13  ;;  %2294 = vmatprep.mubr.msk.f32.mxu0 %vm146_vm0, %v138_v15 }
  0x4d   :  { %2327 = vmatpush3.msra.mxu1 %v2882_v16  ;;  %2310 = vmatprep.mubr.msk.f32.mxu1 %vm146_vm0, %v138_v15 }
  0x4e   :  { %2295 = vmatmul.mubr.msk.f32.gmra.mxu0 %vm146_vm0, %v139_v17  ;;  %2319 = vmatprep.subr.mxu0 %v2765_v8 }
  0x4f   :  { %2328 = vmatprep.subr.mxu1 %v2765_v8  ;;  %2320 = vmatpush3.msra.mxu0 %v2888_v18 }
  0x50   :  { %2311 = vmatmul.mubr.msk.f32.gmra.mxu1 %vm146_vm0, %v139_v17  ;;  %2321 = vmatprep.mubr.msk.f32.mxu0 %vm2766_vm1, %v2765_v8 }
  0x51   :  { %2329 = vmatpush3.msra.mxu1 %v2894_v19  ;;  %2332 = vmatprep.mubr.msk.f32.mxu1 %vm2766_vm1, %v2765_v8 }
  0x52   :  { %2322 = vmatmul.mubr.f32.vlgmr.msra.gmra.mxu0 %v2765_v8  ;;  %2330 = vmatprep.subr.mxu1 %v2765_v8 }
  0x53   :  { %2331 = vmatpush3.msra.mxu1 %v2901_v20  ;;  %2335 = vmatprep.subr.mxu0 %v2765_v8 }
  0x54   :  { %2333 = vmatmul.mubr.f32.vlgmr.msra.gmra.mxu1 %v2765_v8  ;;  %2336 = vmatpush3.msra.mxu0 %v2857_v6 }
  0x55   :  { %2337 = vmatprep.subr.mxu0 %v2765_v8  ;;  %2346 = vmatprep.subr.mxu1 %v2765_v8 }
  0x56   :  { %2338 = vmatpush3.msra.mxu0 %v2864_v10  ;;  %2347 = vmatpush3.msra.mxu1 %v2870_v12 }
  0x57   :  { %2339 = vmatprep.subr.mxu0 %v2765_v8  ;;  %2348 = vmatprep.subr.mxu1 %v2765_v8 }
  0x58   :  { %2340 = vmatpush3.msra.mxu0 %v2876_v14  ;;  %2343 = vmatprep.mubr.msk.f32.mxu0 %vm2766_vm1, %v2765_v8 }
  0x59   :  { %2341 = vmatprep.subr.mxu0 %v2765_v8  ;;  %2349 = vmatpush3.msra.mxu1 %v2882_v16 }
  0x5a   :  { %2342 = vmatpush3.msra.mxu0 %v2888_v18  ;;  %2350 = vmatprep.subr.mxu1 %v2765_v8 }
  0x5b   :  { %2351 = vmatpush3.msra.mxu1 %v2894_v19  ;;  %2354 = vmatprep.mubr.msk.f32.mxu1 %vm2766_vm1, %v2765_v8 }
  0x5c   :  { %2352 = vmatprep.subr.mxu1 %v2765_v8  ;;  %2357 = vmatprep.subr.mxu0 %v2765_v8 }
  0x5d   :  { %2353 = vmatpush3.msra.mxu1 %v2901_v20 }
  0x5e   :  { %2368 = vmatprep.subr.mxu1 %v2765_v8 }
 0x102   :  { %v2287_v22 = vpop.f32.mrf.mxu0 }
 0x103   :  { %v243_v24 = vadd.f32 %v2287_v22, %v2133_v21 }
 0x104   :  { %v2303_v25 = vpop.f32.mrf.mxu1  ;;  %v237_v26 = vpop.f32.mrf.mxu0 }
 0x105   :  { %278 = vst.msk [vmem:[#allocation2 + $0x8] sm:$0xff] %vm276_vm2, %v243_v24  ;;  %v363_v27 = vadd.f32 %v2303_v25, %v2142_v23  ;;  %v238_v28 = vadd.f32 %v2133_v21, %v237_v26 }
 0x106   :  { %v357_v29 = vpop.f32.mrf.mxu1  ;;  %v2290_v30 = vpop.f32.mrf.mxu0 }
 0x107   :  { %397 = vst.msk [vmem:[#allocation3 + $0x8] sm:$0xff] %vm276_vm2, %v363_v27  ;;  %277 = vst.msk [vmem:[#allocation2] sm:$0xff] %vm276_vm2, %v238_v28  ;;  %v358_v31 = vadd.f32 %v2142_v23, %v357_v29  ;;  %v253_v32 = vadd.f32 %v2290_v30, %v2133_v21 }
 0x108   :  { %v2306_v33 = vpop.f32.mrf.mxu1  ;;  %v247_v34 = vpop.f32.mrf.mxu0 }
 0x109   :  { %396 = vst.msk [vmem:[#allocation3] sm:$0xff] %vm276_vm2, %v358_v31  ;;  %280 = vst.msk [vmem:[#allocation2 + $0x18] sm:$0xff] %vm276_vm2, %v253_v32  ;;  %v373_v35 = vadd.f32 %v2306_v33, %v2142_v23  ;;  %v248_v36 = vadd.f32 %v2133_v21, %v247_v34 }
 0x10a   :  { %v367_v37 = vpop.f32.mrf.mxu1  ;;  %v2293_v38 = vpop.f32.mrf.mxu0 }
 0x10b   :  { %399 = vst.msk [vmem:[#allocation3 + $0x18] sm:$0xff] %vm276_vm2, %v373_v35  ;;  %279 = vst.msk [vmem:[#allocation2 + $0x10] sm:$0xff] %vm276_vm2, %v248_v36  ;;  %v368_v39 = vadd.f32 %v2142_v23, %v367_v37  ;;  %v263_v40 = vadd.f32 %v2293_v38, %v2133_v21 }
 0x10c   :  { %v2309_v41 = vpop.f32.mrf.mxu1  ;;  %v257_v42 = vpop.f32.mrf.mxu0 }
 0x10d   :  { %398 = vst.msk [vmem:[#allocation3 + $0x10] sm:$0xff] %vm276_vm2, %v368_v39  ;;  %282 = vst.msk [vmem:[#allocation2 + $0x28] sm:$0xff] %vm276_vm2, %v263_v40  ;;  %v383_v43 = vadd.f32 %v2309_v41, %v2142_v23  ;;  %v258_v44 = vadd.f32 %v2133_v21, %v257_v42 }
 0x10e   :  { %v377_v45 = vpop.f32.mrf.mxu1  ;;  %v2296_v46 = vpop.f32.mrf.mxu0  ;;  %v548_v63 = vld [vmem:[#allocation2] sm:$0xff] }
 0x10f   :  { %401 = vst.msk [vmem:[#allocation3 + $0x28] sm:$0xff] %vm276_vm2, %v383_v43  ;;  %281 = vst.msk [vmem:[#allocation2 + $0x20] sm:$0xff] %vm276_vm2, %v258_v44  ;;  %v378_v47 = vadd.f32 %v2142_v23, %v377_v45  ;;  %v273_v48 = vadd.f32 %v2296_v46, %v2133_v21 }
 0x110   :  { %v2312_v49 = vpop.f32.mrf.mxu1  ;;  %v267_v50 = vpop.f32.mrf.mxu0 }
 0x111   :  { %400 = vst.msk [vmem:[#allocation3 + $0x20] sm:$0xff] %vm276_vm2, %v378_v47  ;;  %284 = vst.msk [vmem:[#allocation2 + $0x38] sm:$0xff] %vm276_vm2, %v273_v48  ;;  %v393_v52 = vadd.f32 %v2312_v49, %v2142_v23  ;;  %v268_v53 = vadd.f32 %v2133_v21, %v267_v50  ;;  %v759_v48 = vld [vmem:[#allocation2 + $0x8] sm:$0xff] }
 0x112   :  { %v474_v54 = vpop.f32.mrf.mxu0  ;;  %v387_v55 = vpop.f32.mrf.mxu1 }
 0x113   :  { %403 = vst.msk [vmem:[#allocation3 + $0x38] sm:$0xff] %vm276_vm2, %v393_v52  ;;  %283 = vst.msk [vmem:[#allocation2 + $0x30] sm:$0xff] %vm276_vm2, %v268_v53  ;;  %v475_v57 = vadd.f32 %v2952_v51, %v474_v54  ;;  %v388_v58 = vadd.f32 %v2142_v23, %v387_v55 }
 0x114   :  { %v2323_v59 = vpop.f32.mrf.mxu0  ;;  %v544_v60 = vpop.f32.mrf.mxu1 }
 0x115   :  { %402 = vst.msk [vmem:[#allocation3 + $0x30] sm:$0xff] %vm276_vm2, %v388_v58  ;;  %v545_v61 = vadd.f32 %v2959_v56, %v544_v60  ;;  %557 = vrot.lane.b32.xlu0 %v475_v57, %s2767_s23  ;;  %v549_v0 = vadd.f32 %v548_v63, %v475_v57 }
 0x116   :  { %v2334_v62 = vpop.f32.mrf.mxu1 }
 0x117   :  { %v2151_v2 = vmul.f32 -1.442695, %v549_v0 }
 0x119   :  { %585 = vrot.lane.b32.xlu0 %v545_v61, %s2767_s23  ;;  %2502 = vpow2.f32 %v2151_v2 }
 0x11a   :  { %v576_v1 = vld [vmem:[#allocation3 + $0x38] sm:$0xff] }
 0x11b   :  { %v577_v3 = vadd.f32 %v576_v1, %v545_v61 }
 0x11c   :  { %v787_v50 = vld [vmem:[#allocation3 + $0x30] sm:$0xff] }
 0x11d   :  { %v2152_v4 = vmul.f32 -1.442695, %v577_v3 }
 0x11f   :  { %2504 = vpow2.f32 %v2152_v4 }
 0x126   :  { %v2503_v5 = vpop.eup %2502 }
 0x127   :  { %v553_v7 = vadd.f32 1.0, %v2503_v5 }
 0x129   :  { %2506 = vrcp.f32 %v553_v7 }
 0x12c   :  { %v2505_v9 = vpop.eup %2504 }
 0x12d   :  { %v581_v11 = vadd.f32 1.0, %v2505_v9 }
 0x12f   :  { %2508 = vrcp.f32 %v581_v11 }
 0x136   :  { %v2507_v13 = vpop.eup %2506 }
 0x137   :  { %v567_v30 = vsub.f32 1.0, %v2507_v13  ;;  %v573_v32 = vmul.f32 0.0, %v2507_v13 }
 0x13c   :  { %v2509_v21 = vpop.eup %2508 }
 0x13d   :  { %v595_v35 = vsub.f32 1.0, %v2509_v21  ;;  %v601_v37 = vmul.f32 0.0, %v2509_v21 }
 0x187   :  { %v558_v15 = vpop.permute.xlu0 %557 }
 0x188   :  { %v560_v17 = vmul.f32 %v2507_v13, %v558_v15 }
 0x18a   :  { %562 = vrot.lane.b32.xlu1 %v560_v17, %s2767_s23 }
 0x18b   :  { %v586_v22 = vpop.permute.xlu0 %585 }
 0x18c   :  { %v588_v23 = vmul.f32 %v2509_v21, %v586_v22 }
 0x18e   :  { %590 = vrot.lane.b32.xlu1 %v588_v23, %s2767_s23 }
 0x1fc   :  { %v563_v24 = vpop.permute.xlu1 %562 }
 0x1fd   :  { %v565_v25 = vadd.f32 %v563_v24, %v548_v63 }
 0x1ff   :  { %2510 = vtanh.f32 %v565_v25 }
 0x200   :  { %v591_v26 = vpop.permute.xlu1 %590 }
 0x201   :  { %v593_v27 = vadd.f32 %v591_v26, %v576_v1 }
 0x203   :  { %2512 = vtanh.f32 %v593_v27 }
 0x20c   :  { %v2511_v28 = vpop.eup %2510 }
 0x20d   :  { %569 = vrot.lane.b32.xlu0 %v2511_v28, %s2768_s24 }
 0x210   :  { %v2513_v29 = vpop.eup %2512 }
 0x211   :  { %597 = vrot.lane.b32.xlu1 %v2513_v29, %s2768_s24 }
 0x27f   :  { %v570_v31 = vpop.permute.xlu0 %569 }
 0x280   :  { %v572_v33 = vmul.f32 %v570_v31, %v567_v30 }
 0x282   :  { %v2972_v34 = vadd.f32 %v573_v32, %v572_v33 }
 0x283   :  { %v598_v36 = vpop.permute.xlu1 %597 }
 0x284   :  { %v600_v38 = vmul.f32 %v598_v36, %v595_v35  ;;  %604 = vrot.lane.b32.xlu0 %v2972_v34, %s2768_s24  ;;  %v971_v35 = vld [vmem:[#allocation2 + $0x10] sm:$0xff] }
 0x286   :  { %v2976_v39 = vadd.f32 %v601_v37, %v600_v38  ;;  %v999_v37 = vld [vmem:[#allocation3 + $0x28] sm:$0xff] }
 0x288   :  { %609 = vrot.lane.b32.xlu1 %v2976_v39, %s2768_s24 }
 0x2f6   :  { %v605_v40 = vpop.permute.xlu0 %604 }
 0x2f7   :  { %607 = vst.msk [vmem:[#allocation13] sm:$0xff] %vm404_vm3, %v605_v40  ;;  %2344 = vmatmul.mubr.msk.f32.vlgmr.msra.gmra.mxu0 %vm404_vm3, %v605_v40 }
 0x2f8   :  { %2358 = vmatpush3.msra.mxu0 %v2857_v6  ;;  %2365 = vmatprep.mubr.msk.f32.mxu0 %vm2766_vm1, %v2765_v8 }
 0x2f9   :  { %2359 = vmatprep.subr.mxu0 %v2765_v8 }
 0x2fa   :  { %v610_v41 = vpop.permute.xlu1 %609  ;;  %2360 = vmatpush3.msra.mxu0 %v2864_v10 }
 0x2fb   :  { %613 = vst.msk [vmem:[#allocation14 + $0x38] sm:$0xff] %vm404_vm3, %v610_v41  ;;  %2355 = vmatmul.mubr.msk.f32.vlgmr.msra.gmra.mxu1 %vm404_vm3, %v610_v41  ;;  %2361 = vmatprep.subr.mxu0 %v2765_v8 }
 0x2fc   :  { %2362 = vmatpush3.msra.mxu0 %v2876_v14  ;;  %2369 = vmatpush3.msra.mxu1 %v2870_v12 }
 0x2fd   :  { %2363 = vmatprep.subr.mxu0 %v2765_v8  ;;  %2370 = vmatprep.subr.mxu1 %v2765_v8 }
 0x2fe   :  { %2364 = vmatpush3.msra.mxu0 %v2888_v18  ;;  %2371 = vmatpush3.msra.mxu1 %v2882_v16 }
 0x2ff   :  { %2372 = vmatprep.subr.mxu1 %v2765_v8  ;;  %2376 = vmatprep.mubr.msk.f32.mxu1 %vm2766_vm1, %v2765_v8 }
 0x300   :  { %2373 = vmatpush3.msra.mxu1 %v2894_v19  ;;  %2379 = vmatprep.subr.mxu0 %v2765_v8 }
 0x301   :  { %2374 = vmatprep.subr.mxu1 %v2765_v8 }
 0x302   :  { %2375 = vmatpush3.msra.mxu1 %v2901_v20 }
 0x303   :  { %2390 = vmatprep.subr.mxu1 %v2765_v8 }
 0x3b7   :  { %v682_v42 = vpop.f32.mrf.mxu0 }
 0x3b8   :  { %v683_v43 = vadd.f32 %v2952_v51, %v682_v42 }
 0x3b9   :  { %v2345_v44 = vpop.f32.mrf.mxu0 }
 0x3ba   :  { %768 = vrot.lane.b32.xlu0 %v683_v43, %s2767_s23  ;;  %v760_v49 = vadd.f32 %v759_v48, %v683_v43 }
 0x3bb   :  { %v754_v45 = vpop.f32.mrf.mxu1 }
 0x3bc   :  { %v755_v46 = vadd.f32 %v2959_v56, %v754_v45  ;;  %v2155_v52 = vmul.f32 -1.442695, %v760_v49 }
 0x3bd   :  { %v2356_v47 = vpop.f32.mrf.mxu1 }
 0x3be   :  { %796 = vrot.lane.b32.xlu1 %v755_v46, %s2767_s23  ;;  %v788_v53 = vadd.f32 %v787_v50, %v755_v46  ;;  %2514 = vpow2.f32 %v2155_v52 }
 0x3c0   :  { %v2156_v54 = vmul.f32 -1.442695, %v788_v53 }
 0x3c2   :  { %2516 = vpow2.f32 %v2156_v54 }
 0x3cb   :  { %v2515_v55 = vpop.eup %2514 }
 0x3cc   :  { %v764_v57 = vadd.f32 1.0, %v2515_v55 }
 0x3ce   :  { %2518 = vrcp.f32 %v764_v57 }
 0x3cf   :  { %v2517_v58 = vpop.eup %2516 }
 0x3d0   :  { %v792_v59 = vadd.f32 1.0, %v2517_v58 }
 0x3d2   :  { %2520 = vrcp.f32 %v792_v59 }
 0x3db   :  { %v2519_v60 = vpop.eup %2518 }
 0x3dc   :  { %v778_v11 = vsub.f32 1.0, %v2519_v60  ;;  %v784_v15 = vmul.f32 %v2519_v60, %v2972_v34 }
 0x3df   :  { %v2521_v63 = vpop.eup %2520 }
 0x3e0   :  { %v806_v22 = vsub.f32 1.0, %v2521_v63  ;;  %v812_v24 = vmul.f32 %v2521_v63, %v2976_v39 }
 0x42c   :  { %v769_v61 = vpop.permute.xlu0 %768 }
 0x42d   :  { %v771_v62 = vmul.f32 %v2519_v60, %v769_v61 }
 0x42f   :  { %773 = vrot.lane.b32.xlu0 %v771_v62, %s2767_s23 }
 0x430   :  { %v797_v0 = vpop.permute.xlu1 %796 }
 0x431   :  { %v799_v1 = vmul.f32 %v2521_v63, %v797_v0 }
 0x433   :  { %801 = vrot.lane.b32.xlu1 %v799_v1, %s2767_s23 }
 0x4a1   :  { %v774_v2 = vpop.permute.xlu0 %773 }
 0x4a2   :  { %v776_v3 = vadd.f32 %v774_v2, %v759_v48 }
 0x4a4   :  { %2522 = vtanh.f32 %v776_v3 }
 0x4a5   :  { %v802_v4 = vpop.permute.xlu1 %801 }
 0x4a6   :  { %v804_v5 = vadd.f32 %v802_v4, %v787_v50 }
 0x4a8   :  { %2524 = vtanh.f32 %v804_v5 }
 0x4b1   :  { %v2523_v7 = vpop.eup %2522 }
 0x4b2   :  { %780 = vrot.lane.b32.xlu0 %v2523_v7, %s2768_s24 }
 0x4b5   :  { %v2525_v9 = vpop.eup %2524 }
 0x4b6   :  { %808 = vrot.lane.b32.xlu1 %v2525_v9, %s2768_s24 }
 0x524   :  { %v781_v13 = vpop.permute.xlu0 %780 }
 0x525   :  { %v783_v17 = vmul.f32 %v781_v13, %v778_v11 }
 0x527   :  { %v3013_v21 = vadd.f32 %v784_v15, %v783_v17 }
 0x528   :  { %v809_v23 = vpop.permute.xlu1 %808 }
 0x529   :  { %v811_v25 = vmul.f32 %v809_v23, %v806_v22  ;;  %815 = vrot.lane.b32.xlu0 %v3013_v21, %s2768_s24  ;;  %v1183_v22 = vld [vmem:[#allocation2 + $0x18] sm:$0xff] }
 0x52b   :  { %v3018_v26 = vadd.f32 %v812_v24, %v811_v25  ;;  %v1211_v24 = vld [vmem:[#allocation3 + $0x20] sm:$0xff] }
 0x52d   :  { %821 = vrot.lane.b32.xlu1 %v3018_v26, %s2768_s24 }
 0x59b   :  { %v816_v27 = vpop.permute.xlu0 %815 }
 0x59c   :  { %819 = vst.msk [vmem:[#allocation13 + $0x8] sm:$0xff] %vm404_vm3, %v816_v27  ;;  %2366 = vmatmul.mubr.msk.f32.vlgmr.msra.gmra.mxu0 %vm404_vm3, %v816_v27 }
 0x59d   :  { %2380 = vmatpush3.msra.mxu0 %v2857_v6  ;;  %2387 = vmatprep.mubr.msk.f32.mxu0 %vm2766_vm1, %v2765_v8 }
 0x59e   :  { %2381 = vmatprep.subr.mxu0 %v2765_v8 }
 0x59f   :  { %v822_v28 = vpop.permute.xlu1 %821  ;;  %2382 = vmatpush3.msra.mxu0 %v2864_v10 }
 0x5a0   :  { %825 = vst.msk [vmem:[#allocation14 + $0x30] sm:$0xff] %vm404_vm3, %v822_v28  ;;  %2377 = vmatmul.mubr.msk.f32.vlgmr.msra.gmra.mxu1 %vm404_vm3, %v822_v28  ;;  %2383 = vmatprep.subr.mxu0 %v2765_v8 }
 0x5a1   :  { %2384 = vmatpush3.msra.mxu0 %v2876_v14  ;;  %2391 = vmatpush3.msra.mxu1 %v2870_v12 }
 0x5a2   :  { %2385 = vmatprep.subr.mxu0 %v2765_v8  ;;  %2392 = vmatprep.subr.mxu1 %v2765_v8 }
 0x5a3   :  { %2386 = vmatpush3.msra.mxu0 %v2888_v18  ;;  %2393 = vmatpush3.msra.mxu1 %v2882_v16 }
 0x5a4   :  { %2394 = vmatprep.subr.mxu1 %v2765_v8  ;;  %2398 = vmatprep.mubr.msk.f32.mxu1 %vm2766_vm1, %v2765_v8 }
 0x5a5   :  { %2395 = vmatpush3.msra.mxu1 %v2894_v19  ;;  %2401 = vmatprep.subr.mxu0 %v2765_v8 }
 0x5a6   :  { %2396 = vmatprep.subr.mxu1 %v2765_v8 }
 0x5a7   :  { %2397 = vmatpush3.msra.mxu1 %v2901_v20 }
 0x5a8   :  { %2412 = vmatprep.subr.mxu1 %v2765_v8 }
 0x65c   :  { %v894_v29 = vpop.f32.mrf.mxu0 }
 0x65d   :  { %v895_v30 = vadd.f32 %v2952_v51, %v894_v29 }
 0x65e   :  { %v2367_v31 = vpop.f32.mrf.mxu0 }
 0x65f   :  { %980 = vrot.lane.b32.xlu0 %v895_v30, %s2767_s23  ;;  %v972_v36 = vadd.f32 %v971_v35, %v895_v30 }
 0x660   :  { %v966_v32 = vpop.f32.mrf.mxu1 }
 0x661   :  { %v967_v33 = vadd.f32 %v2959_v56, %v966_v32  ;;  %v2159_v38 = vmul.f32 -1.442695, %v972_v36 }
 0x662   :  { %v2378_v34 = vpop.f32.mrf.mxu1 }
 0x663   :  { %1008 = vrot.lane.b32.xlu1 %v967_v33, %s2767_s23  ;;  %v1000_v39 = vadd.f32 %v999_v37, %v967_v33  ;;  %2526 = vpow2.f32 %v2159_v38 }
 0x665   :  { %v2160_v40 = vmul.f32 -1.442695, %v1000_v39 }
 0x667   :  { %2528 = vpow2.f32 %v2160_v40 }
 0x670   :  { %v2527_v41 = vpop.eup %2526 }
 0x671   :  { %v976_v42 = vadd.f32 1.0, %v2527_v41 }
 0x673   :  { %2530 = vrcp.f32 %v976_v42 }
 0x674   :  { %v2529_v43 = vpop.eup %2528 }
 0x675   :  { %v1004_v44 = vadd.f32 1.0, %v2529_v43 }
 0x677   :  { %2532 = vrcp.f32 %v1004_v44 }
 0x680   :  { %v2531_v45 = vpop.eup %2530 }
 0x681   :  { %v990_v59 = vsub.f32 1.0, %v2531_v45  ;;  %v996_v61 = vmul.f32 %v2531_v45, %v3013_v21 }
 0x684   :  { %v2533_v48 = vpop.eup %2532 }
 0x685   :  { %v1018_v0 = vsub.f32 1.0, %v2533_v48  ;;  %v1024_v2 = vmul.f32 %v2533_v48, %v3018_v26 }
 0x6d1   :  { %v981_v46 = vpop.permute.xlu0 %980 }
 0x6d2   :  { %v983_v47 = vmul.f32 %v2531_v45, %v981_v46 }
 0x6d4   :  { %985 = vrot.lane.b32.xlu0 %v983_v47, %s2767_s23 }
 0x6d5   :  { %v1009_v49 = vpop.permute.xlu1 %1008 }
 0x6d6   :  { %v1011_v50 = vmul.f32 %v2533_v48, %v1009_v49 }
 0x6d8   :  { %1013 = vrot.lane.b32.xlu1 %v1011_v50, %s2767_s23 }
 0x746   :  { %v986_v52 = vpop.permute.xlu0 %985 }
 0x747   :  { %v988_v53 = vadd.f32 %v986_v52, %v971_v35 }
 0x749   :  { %2534 = vtanh.f32 %v988_v53 }
 0x74a   :  { %v1014_v54 = vpop.permute.xlu1 %1013 }
 0x74b   :  { %v1016_v55 = vadd.f32 %v1014_v54, %v999_v37 }
 0x74d   :  { %2536 = vtanh.f32 %v1016_v55 }
 0x756   :  { %v2535_v57 = vpop.eup %2534 }
 0x757   :  { %992 = vrot.lane.b32.xlu0 %v2535_v57, %s2768_s24 }
 0x75a   :  { %v2537_v58 = vpop.eup %2536 }
 0x75b   :  { %1020 = vrot.lane.b32.xlu1 %v2537_v58, %s2768_s24 }
 0x7c9   :  { %v993_v60 = vpop.permute.xlu0 %992 }
 0x7ca   :  { %v995_v62 = vmul.f32 %v993_v60, %v990_v59 }
 0x7cc   :  { %v3055_v63 = vadd.f32 %v996_v61, %v995_v62 }
 0x7cd   :  { %v1021_v1 = vpop.permute.xlu1 %1020 }
 0x7ce   :  { %v1023_v3 = vmul.f32 %v1021_v1, %v1018_v0  ;;  %1027 = vrot.lane.b32.xlu0 %v3055_v63, %s2768_s24  ;;  %v1395_v0 = vld [vmem:[#allocation2 + $0x20] sm:$0xff] }
 0x7d0   :  { %v3060_v4 = vadd.f32 %v1024_v2, %v1023_v3  ;;  %v1423_v2 = vld [vmem:[#allocation3 + $0x18] sm:$0xff] }
 0x7d2   :  { %1033 = vrot.lane.b32.xlu1 %v3060_v4, %s2768_s24 }
 0x840   :  { %v1028_v5 = vpop.permute.xlu0 %1027 }
 0x841   :  { %1031 = vst.msk [vmem:[#allocation13 + $0x10] sm:$0xff] %vm404_vm3, %v1028_v5  ;;  %2388 = vmatmul.mubr.msk.f32.vlgmr.msra.gmra.mxu0 %vm404_vm3, %v1028_v5 }
 0x842   :  { %2402 = vmatpush3.msra.mxu0 %v2857_v6  ;;  %2409 = vmatprep.mubr.msk.f32.mxu0 %vm2766_vm1, %v2765_v8 }
 0x843   :  { %2403 = vmatprep.subr.mxu0 %v2765_v8 }
 0x844   :  { %v1034_v7 = vpop.permute.xlu1 %1033  ;;  %2404 = vmatpush3.msra.mxu0 %v2864_v10 }
 0x845   :  { %1037 = vst.msk [vmem:[#allocation14 + $0x28] sm:$0xff] %vm404_vm3, %v1034_v7  ;;  %2399 = vmatmul.mubr.msk.f32.vlgmr.msra.gmra.mxu1 %vm404_vm3, %v1034_v7  ;;  %2405 = vmatprep.subr.mxu0 %v2765_v8 }
 0x846   :  { %2406 = vmatpush3.msra.mxu0 %v2876_v14  ;;  %2413 = vmatpush3.msra.mxu1 %v2870_v12 }
 0x847   :  { %2407 = vmatprep.subr.mxu0 %v2765_v8  ;;  %2414 = vmatprep.subr.mxu1 %v2765_v8 }
 0x848   :  { %2408 = vmatpush3.msra.mxu0 %v2888_v18  ;;  %2415 = vmatpush3.msra.mxu1 %v2882_v16 }
 0x849   :  { %2416 = vmatprep.subr.mxu1 %v2765_v8  ;;  %2420 = vmatprep.mubr.msk.f32.mxu1 %vm2766_vm1, %v2765_v8 }
 0x84a   :  { %2417 = vmatpush3.msra.mxu1 %v2894_v19  ;;  %2423 = vmatprep.subr.mxu0 %v2765_v8 }
 0x84b   :  { %2418 = vmatprep.subr.mxu1 %v2765_v8 }
 0x84c   :  { %2419 = vmatpush3.msra.mxu1 %v2901_v20 }
 0x84d   :  { %2434 = vmatprep.subr.mxu1 %v2765_v8 }
 0x901   :  { %v1106_v9 = vpop.f32.mrf.mxu0 }
 0x902   :  { %v1107_v11 = vadd.f32 %v2952_v51, %v1106_v9 }
 0x903   :  { %v2389_v13 = vpop.f32.mrf.mxu0 }
 0x904   :  { %1192 = vrot.lane.b32.xlu0 %v1107_v11, %s2767_s23  ;;  %v1184_v23 = vadd.f32 %v1183_v22, %v1107_v11 }
 0x905   :  { %v1178_v15 = vpop.f32.mrf.mxu1 }
 0x906   :  { %v1179_v17 = vadd.f32 %v2959_v56, %v1178_v15  ;;  %v2163_v25 = vmul.f32 -1.442695, %v1184_v23 }
 0x907   :  { %v2400_v21 = vpop.f32.mrf.mxu1 }
 0x908   :  { %1220 = vrot.lane.b32.xlu1 %v1179_v17, %s2767_s23  ;;  %v1212_v26 = vadd.f32 %v1211_v24, %v1179_v17  ;;  %2538 = vpow2.f32 %v2163_v25 }
 0x90a   :  { %v2164_v27 = vmul.f32 -1.442695, %v1212_v26 }
 0x90c   :  { %2540 = vpow2.f32 %v2164_v27 }
 0x915   :  { %v2539_v28 = vpop.eup %2538 }
 0x916   :  { %v1188_v29 = vadd.f32 1.0, %v2539_v28 }
 0x918   :  { %2542 = vrcp.f32 %v1188_v29 }
 0x919   :  { %v2541_v30 = vpop.eup %2540 }
 0x91a   :  { %v1216_v31 = vadd.f32 1.0, %v2541_v30 }
 0x91c   :  { %2544 = vrcp.f32 %v1216_v31 }
 0x925   :  { %v2543_v32 = vpop.eup %2542 }
 0x926   :  { %v1202_v44 = vsub.f32 1.0, %v2543_v32  ;;  %v1208_v46 = vmul.f32 %v2543_v32, %v3055_v63 }
 0x929   :  { %v2545_v35 = vpop.eup %2544 }
 0x92a   :  { %v1230_v49 = vsub.f32 1.0, %v2545_v35  ;;  %v1236_v52 = vmul.f32 %v2545_v35, %v3060_v4 }
 0x976   :  { %v1193_v33 = vpop.permute.xlu0 %1192 }
 0x977   :  { %v1195_v34 = vmul.f32 %v2543_v32, %v1193_v33 }
 0x979   :  { %1197 = vrot.lane.b32.xlu0 %v1195_v34, %s2767_s23 }
 0x97a   :  { %v1221_v36 = vpop.permute.xlu1 %1220 }
 0x97b   :  { %v1223_v37 = vmul.f32 %v2545_v35, %v1221_v36 }
 0x97d   :  { %1225 = vrot.lane.b32.xlu1 %v1223_v37, %s2767_s23 }
 0x9eb   :  { %v1198_v38 = vpop.permute.xlu0 %1197 }
 0x9ec   :  { %v1200_v39 = vadd.f32 %v1198_v38, %v1183_v22 }
 0x9ee   :  { %2546 = vtanh.f32 %v1200_v39 }
 0x9ef   :  { %v1226_v40 = vpop.permute.xlu1 %1225 }
 0x9f0   :  { %v1228_v41 = vadd.f32 %v1226_v40, %v1211_v24 }
 0x9f2   :  { %2548 = vtanh.f32 %v1228_v41 }
 0x9fb   :  { %v2547_v42 = vpop.eup %2546 }
 0x9fc   :  { %1204 = vrot.lane.b32.xlu0 %v2547_v42, %s2768_s24 }
 0x9ff   :  { %v2549_v43 = vpop.eup %2548 }
 0xa00   :  { %1232 = vrot.lane.b32.xlu1 %v2549_v43, %s2768_s24 }
 0xa6e   :  { %v1205_v45 = vpop.permute.xlu0 %1204 }
 0xa6f   :  { %v1207_v47 = vmul.f32 %v1205_v45, %v1202_v44  ;;  %v1635_v44 = vld [vmem:[#allocation3 + $0x10] sm:$0xff] }
 0xa71   :  { %v3097_v48 = vadd.f32 %v1208_v46, %v1207_v47 }
 0xa72   :  { %v1233_v50 = vpop.permute.xlu1 %1232 }
 0xa73   :  { %v1235_v53 = vmul.f32 %v1233_v50, %v1230_v49  ;;  %1239 = vrot.lane.b32.xlu0 %v3097_v48, %s2768_s24 }
 0xa75   :  { %v3102_v54 = vadd.f32 %v1236_v52, %v1235_v53 }
 0xa77   :  { %1245 = vrot.lane.b32.xlu1 %v3102_v54, %s2768_s24 }
 0xae5   :  { %v1240_v55 = vpop.permute.xlu0 %1239 }
 0xae6   :  { %1243 = vst.msk [vmem:[#allocation13 + $0x18] sm:$0xff] %vm404_vm3, %v1240_v55  ;;  %2410 = vmatmul.mubr.msk.f32.vlgmr.msra.gmra.mxu0 %vm404_vm3, %v1240_v55 }
 0xae7   :  { %2424 = vmatpush3.msra.mxu0 %v2857_v6  ;;  %2431 = vmatprep.mubr.msk.f32.mxu0 %vm2766_vm1, %v2765_v8 }
 0xae8   :  { %2425 = vmatprep.subr.mxu0 %v2765_v8 }
 0xae9   :  { %v1246_v57 = vpop.permute.xlu1 %1245  ;;  %2426 = vmatpush3.msra.mxu0 %v2864_v10 }
 0xaea   :  { %1249 = vst.msk [vmem:[#allocation14 + $0x20] sm:$0xff] %vm404_vm3, %v1246_v57  ;;  %2421 = vmatmul.mubr.msk.f32.vlgmr.msra.gmra.mxu1 %vm404_vm3, %v1246_v57  ;;  %2427 = vmatprep.subr.mxu0 %v2765_v8 }
 0xaeb   :  { %2428 = vmatpush3.msra.mxu0 %v2876_v14  ;;  %2435 = vmatpush3.msra.mxu1 %v2870_v12 }
 0xaec   :  { %2429 = vmatprep.subr.mxu0 %v2765_v8  ;;  %2436 = vmatprep.subr.mxu1 %v2765_v8 }
 0xaed   :  { %2430 = vmatpush3.msra.mxu0 %v2888_v18  ;;  %2437 = vmatpush3.msra.mxu1 %v2882_v16 }
 0xaee   :  { %2438 = vmatprep.subr.mxu1 %v2765_v8  ;;  %2442 = vmatprep.mubr.msk.f32.mxu1 %vm2766_vm1, %v2765_v8 }
 0xaef   :  { %2439 = vmatpush3.msra.mxu1 %v2894_v19  ;;  %2445 = vmatprep.subr.mxu0 %v2765_v8 }
 0xaf0   :  { %2440 = vmatprep.subr.mxu1 %v2765_v8 }
 0xaf1   :  { %2441 = vmatpush3.msra.mxu1 %v2901_v20 }
 0xaf2   :  { %2456 = vmatprep.subr.mxu1 %v2765_v8 }
 0xba6   :  { %v1318_v58 = vpop.f32.mrf.mxu0 }
 0xba7   :  { %v1319_v59 = vadd.f32 %v2952_v51, %v1318_v58 }
 0xba8   :  { %v2411_v60 = vpop.f32.mrf.mxu0 }
 0xba9   :  { %1404 = vrot.lane.b32.xlu0 %v1319_v59, %s2767_s23  ;;  %v1396_v1 = vadd.f32 %v1395_v0, %v1319_v59 }
 0xbaa   :  { %v1390_v61 = vpop.f32.mrf.mxu1 }
 0xbab   :  { %v1391_v62 = vadd.f32 %v2959_v56, %v1390_v61  ;;  %v2167_v3 = vmul.f32 -1.442695, %v1396_v1 }
 0xbac   :  { %v2422_v63 = vpop.f32.mrf.mxu1 }
 0xbad   :  { %1432 = vrot.lane.b32.xlu1 %v1391_v62, %s2767_s23  ;;  %v1424_v4 = vadd.f32 %v1423_v2, %v1391_v62  ;;  %2550 = vpow2.f32 %v2167_v3 }
 0xbaf   :  { %v2168_v5 = vmul.f32 -1.442695, %v1424_v4 }
 0xbb1   :  { %2552 = vpow2.f32 %v2168_v5 }
 0xbba   :  { %v2551_v7 = vpop.eup %2550 }
 0xbbb   :  { %v1400_v9 = vadd.f32 1.0, %v2551_v7 }
 0xbbd   :  { %2554 = vrcp.f32 %v1400_v9 }
 0xbbe   :  { %v2553_v11 = vpop.eup %2552 }
 0xbbf   :  { %v1428_v13 = vadd.f32 1.0, %v2553_v11 }
 0xbc1   :  { %2556 = vrcp.f32 %v1428_v13 }
 0xbca   :  { %v2555_v15 = vpop.eup %2554 }
 0xbcb   :  { %v1414_v31 = vsub.f32 1.0, %v2555_v15  ;;  %v1420_v33 = vmul.f32 %v2555_v15, %v3097_v48 }
 0xbce   :  { %v2557_v22 = vpop.eup %2556 }
 0xbcf   :  { %v1442_v36 = vsub.f32 1.0, %v2557_v22  ;;  %v1448_v38 = vmul.f32 %v2557_v22, %v3102_v54 }
 0xc1b   :  { %v1405_v17 = vpop.permute.xlu0 %1404 }
 0xc1c   :  { %v1407_v21 = vmul.f32 %v2555_v15, %v1405_v17 }
 0xc1e   :  { %1409 = vrot.lane.b32.xlu0 %v1407_v21, %s2767_s23  ;;  %v2598_v21 = vld [vmem:[#allocation9 + $0x18] sm:$0xff] }
 0xc1f   :  { %v1433_v23 = vpop.permute.xlu1 %1432 }
 0xc20   :  { %v1435_v24 = vmul.f32 %v2557_v22, %v1433_v23  ;;  %v2599_v23 = vld [vmem:[#allocation9 + $0x10] sm:$0xff] }
 0xc22   :  { %1437 = vrot.lane.b32.xlu1 %v1435_v24, %s2767_s23  ;;  %v2600_v24 = vld [vmem:[#allocation9 + $0x8] sm:$0xff] }
 0xc90   :  { %v1410_v25 = vpop.permute.xlu0 %1409 }
 0xc91   :  { %v1412_v26 = vadd.f32 %v1410_v25, %v1395_v0  ;;  %v2601_v25 = vld [vmem:[#allocation12 + $0x18] sm:$0xff] }
 0xc93   :  { %2558 = vtanh.f32 %v1412_v26  ;;  %v2602_v26 = vld [vmem:[#allocation9] sm:$0xff] }
 0xc94   :  { %v1438_v27 = vpop.permute.xlu1 %1437 }
 0xc95   :  { %v1440_v28 = vadd.f32 %v1438_v27, %v1423_v2  ;;  %v2603_v27 = vld [vmem:[#allocation12 + $0x10] sm:$0xff] }
 0xc97   :  { %2560 = vtanh.f32 %v1440_v28  ;;  %v2604_v28 = vld [vmem:[#allocation12 + $0x8] sm:$0xff] }
 0xca0   :  { %v2559_v29 = vpop.eup %2558 }
 0xca1   :  { %1416 = vrot.lane.b32.xlu0 %v2559_v29, %s2768_s24  ;;  %v2605_v29 = vld [vmem:[#allocation12] sm:$0xff] }
 0xca4   :  { %v2561_v30 = vpop.eup %2560 }
 0xca5   :  { %1444 = vrot.lane.b32.xlu1 %v2561_v30, %s2768_s24 }
 0xd13   :  { %v1417_v32 = vpop.permute.xlu0 %1416 }
 0xd14   :  { %v1419_v34 = vmul.f32 %v1417_v32, %v1414_v31 }
 0xd16   :  { %v3139_v35 = vadd.f32 %v1420_v33, %v1419_v34 }
 0xd17   :  { %v1445_v37 = vpop.permute.xlu1 %1444 }
 0xd18   :  { %v1447_v39 = vmul.f32 %v1445_v37, %v1442_v36  ;;  %1451 = vrot.lane.b32.xlu0 %v3139_v35, %s2768_s24  ;;  %v1819_v36 = vld [vmem:[#allocation2 + $0x30] sm:$0xff] }
 0xd1a   :  { %v3144_v40 = vadd.f32 %v1448_v38, %v1447_v39  ;;  %v1847_v38 = vld [vmem:[#allocation3 + $0x8] sm:$0xff] }
 0xd1c   :  { %1457 = vrot.lane.b32.xlu1 %v3144_v40, %s2768_s24 }
 0xd8a   :  { %v1452_v41 = vpop.permute.xlu0 %1451 }
 0xd8b   :  { %1455 = vst.msk [vmem:[#allocation13 + $0x20] sm:$0xff] %vm404_vm3, %v1452_v41  ;;  %2432 = vmatmul.mubr.msk.f32.vlgmr.msra.gmra.mxu0 %vm404_vm3, %v1452_v41 }
 0xd8c   :  { %2446 = vmatpush3.msra.mxu0 %v2857_v6  ;;  %2453 = vmatprep.mubr.msk.f32.mxu0 %vm2766_vm1, %v2765_v8 }
 0xd8d   :  { %2447 = vmatprep.subr.mxu0 %v2765_v8 }
 0xd8e   :  { %v1458_v42 = vpop.permute.xlu1 %1457  ;;  %2448 = vmatpush3.msra.mxu0 %v2864_v10 }
 0xd8f   :  { %1461 = vst.msk [vmem:[#allocation14 + $0x18] sm:$0xff] %vm404_vm3, %v1458_v42  ;;  %2443 = vmatmul.mubr.msk.f32.vlgmr.msra.gmra.mxu1 %vm404_vm3, %v1458_v42  ;;  %2449 = vmatprep.subr.mxu0 %v2765_v8 }
 0xd90   :  { %2450 = vmatpush3.msra.mxu0 %v2876_v14  ;;  %2457 = vmatpush3.msra.mxu1 %v2870_v12 }
 0xd91   :  { %2451 = vmatprep.subr.mxu0 %v2765_v8  ;;  %2458 = vmatprep.subr.mxu1 %v2765_v8 }
 0xd92   :  { %2452 = vmatpush3.msra.mxu0 %v2888_v18  ;;  %2459 = vmatpush3.msra.mxu1 %v2882_v16 }
 0xd93   :  { %2460 = vmatprep.subr.mxu1 %v2765_v8  ;;  %2464 = vmatprep.mubr.msk.f32.mxu1 %vm2766_vm1, %v2765_v8 }
 0xd94   :  { %2461 = vmatpush3.msra.mxu1 %v2894_v19  ;;  %2467 = vmatprep.subr.mxu0 %v2765_v8  ;;  %v1607_v19 = vld [vmem:[#allocation2 + $0x28] sm:$0xff] }
 0xd95   :  { %2462 = vmatprep.subr.mxu1 %v2765_v8 }
 0xd96   :  { %2463 = vmatpush3.msra.mxu1 %v2901_v20 }
 0xd97   :  { %2478 = vmatprep.subr.mxu1 %v2765_v8 }
 0xe4b   :  { %v1530_v6 = vpop.f32.mrf.mxu0 }
 0xe4c   :  { %v1531_v10 = vadd.f32 %v2952_v51, %v1530_v6 }
 0xe4d   :  { %v2433_v12 = vpop.f32.mrf.mxu0 }
 0xe4e   :  { %1616 = vrot.lane.b32.xlu0 %v1531_v10, %s2767_s23  ;;  %v1608_v43 = vadd.f32 %v1607_v19, %v1531_v10 }
 0xe4f   :  { %v1602_v14 = vpop.f32.mrf.mxu1 }
 0xe50   :  { %v1603_v16 = vadd.f32 %v2959_v56, %v1602_v14  ;;  %v2171_v45 = vmul.f32 -1.442695, %v1608_v43 }
 0xe51   :  { %v2444_v18 = vpop.f32.mrf.mxu1 }
 0xe52   :  { %1644 = vrot.lane.b32.xlu1 %v1603_v16, %s2767_s23  ;;  %v1636_v46 = vadd.f32 %v1635_v44, %v1603_v16  ;;  %2562 = vpow2.f32 %v2171_v45 }
 0xe54   :  { %v2172_v20 = vmul.f32 -1.442695, %v1636_v46 }
 0xe56   :  { %2564 = vpow2.f32 %v2172_v20 }
 0xe5f   :  { %v2563_v47 = vpop.eup %2562 }
 0xe60   :  { %v1612_v48 = vadd.f32 1.0, %v2563_v47 }
 0xe62   :  { %2566 = vrcp.f32 %v1612_v48 }
 0xe63   :  { %v2565_v49 = vpop.eup %2564 }
 0xe64   :  { %v1640_v50 = vadd.f32 1.0, %v2565_v49 }
 0xe66   :  { %2568 = vrcp.f32 %v1640_v50 }
 0xe6f   :  { %v2567_v52 = vpop.eup %2566 }
 0xe70   :  { %v1626_v1 = vsub.f32 1.0, %v2567_v52  ;;  %v1632_v3 = vmul.f32 %v2567_v52, %v3139_v35 }
 0xe73   :  { %v2569_v55 = vpop.eup %2568 }
 0xe74   :  { %v1654_v7 = vsub.f32 1.0, %v2569_v55  ;;  %v1660_v11 = vmul.f32 %v2569_v55, %v3144_v40 }
 0xec0   :  { %v1617_v53 = vpop.permute.xlu0 %1616 }
 0xec1   :  { %v1619_v54 = vmul.f32 %v2567_v52, %v1617_v53 }
 0xec3   :  { %1621 = vrot.lane.b32.xlu0 %v1619_v54, %s2767_s23 }
 0xec4   :  { %v1645_v57 = vpop.permute.xlu1 %1644 }
 0xec5   :  { %v1647_v58 = vmul.f32 %v2569_v55, %v1645_v57 }
 0xec7   :  { %1649 = vrot.lane.b32.xlu1 %v1647_v58, %s2767_s23 }
 0xf35   :  { %v1622_v59 = vpop.permute.xlu0 %1621 }
 0xf36   :  { %v1624_v60 = vadd.f32 %v1622_v59, %v1607_v19 }
 0xf38   :  { %2570 = vtanh.f32 %v1624_v60 }
 0xf39   :  { %v1650_v61 = vpop.permute.xlu1 %1649 }
 0xf3a   :  { %v1652_v62 = vadd.f32 %v1650_v61, %v1635_v44 }
 0xf3c   :  { %2572 = vtanh.f32 %v1652_v62  ;;  %v2606_v62 = vld [vmem:[%s3252_s4] ss:$0 sm:$0xff]  ;;  %s2769_s4 = smov [#allocation13]  }
 0xf45   :  { %v2571_v63 = vpop.eup %2570 }
 0xf46   :  { %1628 = vrot.lane.b32.xlu0 %v2571_v63, %s2768_s24 }
 0xf49   :  { %v2573_v0 = vpop.eup %2572 }
 0xf4a   :  { %1656 = vrot.lane.b32.xlu1 %v2573_v0, %s2768_s24 }
 0xfb8   :  { %v1629_v2 = vpop.permute.xlu0 %1628 }
 0xfb9   :  { %v1631_v4 = vmul.f32 %v1629_v2, %v1626_v1  ;;  %v2607_v2 = vld [vmem:[%s3256_s8] ss:$0 sm:$0xff]  ;;  %s2101_s8 = sshll.u32 %s2769_s4, 4  ;;  %s2102_s8 = int_to_ptr.vmem [resolvable:$true] %s2101_s8 }
 0xfba   :  { %s2708_s30 = scalar_lea.vmem %s2102_s8, 1024  ;;  %p2713_p12 = scmp.lt.s32.totalorder %s2102_s8, %s2102_s8 }
 0xfbb   :  { %v3181_v5 = vadd.f32 %v1632_v3, %v1631_v4  ;;  %p2709_p11 = scmp.ne.s32.totalorder %s2102_s8, %s2708_s30  ;;  %p2714_p13 = scmp.lt.s32.totalorder %s2708_s30, %s2708_s30 }
 0xfbc   :  { %v1657_v9 = vpop.permute.xlu1 %1656 }
 0xfbd   :  { %v1659_v13 = vmul.f32 %v1657_v9, %v1654_v7  ;;  %1663 = vrot.lane.b32.xlu0 %v3181_v5, %s2768_s24  ;;  %v2058_v9 = vld [vmem:[#allocation3] sm:$0xff]  ;;  %p2715_p0 = por %p2714_p13, %p2713_p12 }
 0xfbf   :  { %v3186_v15 = vadd.f32 %v1660_v11, %v1659_v13  ;;  %p2716_p1 = pnand %p2715_p0, %p2709_p11 }
 0xfc1   :  { %1669 = vrot.lane.b32.xlu1 %v3186_v15, %s2768_s24 }
0x102f   :  { %v1664_v17 = vpop.permute.xlu0 %1663 }
0x1030   :  { %1667 = vst.msk [vmem:[#allocation13 + $0x28] sm:$0xff] %vm404_vm3, %v1664_v17  ;;  %2454 = vmatmul.mubr.msk.f32.vlgmr.msra.gmra.mxu0 %vm404_vm3, %v1664_v17 }
0x1031   :  { %2468 = vmatpush3.msra.mxu0 %v2598_v21  ;;  %2475 = vmatprep.mubr.msk.f32.mxu0 %vm2766_vm1, %v2765_v8 }
0x1032   :  { %2469 = vmatprep.subr.mxu0 %v2765_v8 }
0x1033   :  { %v1670_v22 = vpop.permute.xlu1 %1669  ;;  %2470 = vmatpush3.msra.mxu0 %v2599_v23 }
0x1034   :  { %1673 = vst.msk [vmem:[#allocation14 + $0x10] sm:$0xff] %vm404_vm3, %v1670_v22  ;;  %2465 = vmatmul.mubr.msk.f32.vlgmr.msra.gmra.mxu1 %vm404_vm3, %v1670_v22  ;;  %2471 = vmatprep.subr.mxu0 %v2765_v8 }
0x1035   :  { %2472 = vmatpush3.msra.mxu0 %v2600_v24  ;;  %2479 = vmatpush3.msra.mxu1 %v2601_v25 }
0x1036   :  { %2473 = vmatprep.subr.mxu0 %v2765_v8  ;;  %2480 = vmatprep.subr.mxu1 %v2765_v8 }
0x1037   :  { %2474 = vmatpush3.msra.mxu0 %v2602_v26  ;;  %2481 = vmatpush3.msra.mxu1 %v2603_v27 }
0x1038   :  { %2482 = vmatprep.subr.mxu1 %v2765_v8  ;;  %2486 = vmatprep.mubr.msk.f32.mxu1 %vm2766_vm1, %v2765_v8 }
0x1039   :  { %2483 = vmatpush3.msra.mxu1 %v2604_v28 }
0x103a   :  { %2484 = vmatprep.subr.mxu1 %v2765_v8 }
0x103b   :  { %2485 = vmatpush3.msra.mxu1 %v2605_v29 }
0x10f0   :  { %v1742_v30 = vpop.f32.mrf.mxu0 }
0x10f1   :  { %v1743_v31 = vadd.f32 %v2952_v51, %v1742_v30 }
0x10f2   :  { %v2455_v32 = vpop.f32.mrf.mxu0 }
0x10f3   :  { %1828 = vrot.lane.b32.xlu0 %v1743_v31, %s2767_s23  ;;  %v1820_v37 = vadd.f32 %v1819_v36, %v1743_v31 }
0x10f4   :  { %v1814_v33 = vpop.f32.mrf.mxu1 }
0x10f5   :  { %v1815_v34 = vadd.f32 %v2959_v56, %v1814_v33  ;;  %v2175_v39 = vmul.f32 -1.442695, %v1820_v37 }
0x10f6   :  { %v2466_v35 = vpop.f32.mrf.mxu1 }
0x10f7   :  { %1856 = vrot.lane.b32.xlu1 %v1815_v34, %s2767_s23  ;;  %v1848_v40 = vadd.f32 %v1847_v38, %v1815_v34  ;;  %2574 = vpow2.f32 %v2175_v39 }
0x10f9   :  { %v2176_v8 = vmul.f32 -1.442695, %v1848_v40 }
0x10fb   :  { %2576 = vpow2.f32 %v2176_v8 }
0x1104   :  { %v2575_v41 = vpop.eup %2574 }
0x1105   :  { %v1824_v42 = vadd.f32 1.0, %v2575_v41 }
0x1107   :  { %2578 = vrcp.f32 %v1824_v42 }
0x1108   :  { %v2577_v51 = vpop.eup %2576 }
0x1109   :  { %v1852_v6 = vadd.f32 1.0, %v2577_v51 }
0x110b   :  { %2580 = vrcp.f32 %v1852_v6 }
0x1114   :  { %v2579_v10 = vpop.eup %2578 }
0x1115   :  { %v1838_v47 = vsub.f32 1.0, %v2579_v10  ;;  %v1844_v49 = vmul.f32 %v2579_v10, %v3181_v5  ;;  %v2031_v5 = vld [vmem:[#allocation2 + $0x38] sm:$0xff] }
0x1118   :  { %v2581_v14 = vpop.eup %2580 }
0x1119   :  { %v1866_v53 = vsub.f32 1.0, %v2581_v14  ;;  %v1872_v55 = vmul.f32 %v2581_v14, %v3186_v15 }
0x1165   :  { %v1829_v12 = vpop.permute.xlu0 %1828 }
0x1166   :  { %v1831_v56 = vmul.f32 %v2579_v10, %v1829_v12 }
0x1168   :  { %1833 = vrot.lane.b32.xlu0 %v1831_v56, %s2767_s23 }
0x1169   :  { %v1857_v16 = vpop.permute.xlu1 %1856 }
0x116a   :  { %v1859_v18 = vmul.f32 %v2581_v14, %v1857_v16 }
0x116c   :  { %1861 = vrot.lane.b32.xlu1 %v1859_v18, %s2767_s23 }
0x11da   :  { %v1834_v19 = vpop.permute.xlu0 %1833 }
0x11db   :  { %v1836_v43 = vadd.f32 %v1834_v19, %v1819_v36 }
0x11dd   :  { %2582 = vtanh.f32 %v1836_v43 }
0x11de   :  { %v1862_v44 = vpop.permute.xlu1 %1861 }
0x11df   :  { %v1864_v45 = vadd.f32 %v1862_v44, %v1847_v38 }
0x11e1   :  { %2584 = vtanh.f32 %v1864_v45 }
0x11ea   :  { %v2583_v46 = vpop.eup %2582 }
0x11eb   :  { %1840 = vrot.lane.b32.xlu0 %v2583_v46, %s2768_s24 }
0x11ee   :  { %v2585_v20 = vpop.eup %2584 }
0x11ef   :  { %1868 = vrot.lane.b32.xlu1 %v2585_v20, %s2768_s24 }
0x125d   :  { %v1841_v48 = vpop.permute.xlu0 %1840 }
0x125e   :  { %v1843_v50 = vmul.f32 %v1841_v48, %v1838_v47 }
0x1260   :  { %v1845_v52 = vadd.f32 %v1844_v49, %v1843_v50 }
0x1261   :  { %v1869_v54 = vpop.permute.xlu1 %1868 }
0x1262   :  { %v1871_v57 = vmul.f32 %v1869_v54, %v1866_v53  ;;  %1875 = vrot.lane.b32.xlu0 %v1845_v52, %s2768_s24 }
0x1264   :  { %v1873_v58 = vadd.f32 %v1872_v55, %v1871_v57 }
0x1266   :  { %1881 = vrot.lane.b32.xlu1 %v1873_v58, %s2768_s24 }
0x12d4   :  { %v1876_v59 = vpop.permute.xlu0 %1875 }
0x12d5   :  { %1879 = vst.msk [vmem:[#allocation13 + $0x30] sm:$0xff] %vm404_vm3, %v1876_v59  ;;  %2476 = vmatmul.mubr.msk.f32.vlgmr.msra.gmra.mxu0 %vm404_vm3, %v1876_v59 }
0x12d8   :  { %v1882_v60 = vpop.permute.xlu1 %1881 }
0x12d9   :  { %1885 = vst.msk [vmem:[#allocation14 + $0x8] sm:$0xff] %vm404_vm3, %v1882_v60  ;;  %2487 = vmatmul.mubr.msk.f32.vlgmr.msra.gmra.mxu1 %vm404_vm3, %v1882_v60 }
0x1395   :  { %v1954_v61 = vpop.f32.mrf.mxu0 }
0x1396   :  { %v1955_v63 = vadd.f32 %v2606_v62, %v1954_v61 }
0x1397   :  { %v2477_v0 = vpop.f32.mrf.mxu0 }
0x1398   :  { %2040 = vrot.lane.b32.xlu0 %v1955_v63, %s2767_s23  ;;  %v2032_v7 = vadd.f32 %v2031_v5, %v1955_v63 }
0x1399   :  { %v2026_v1 = vpop.f32.mrf.mxu1 }
0x139a   :  { %v2027_v3 = vadd.f32 %v2607_v2, %v2026_v1  ;;  %v2179_v11 = vmul.f32 -1.442695, %v2032_v7 }
0x139b   :  { %v2488_v4 = vpop.f32.mrf.mxu1 }
0x139c   :  { %2067 = vrot.lane.b32.xlu1 %v2027_v3, %s2767_s23  ;;  %v2059_v13 = vadd.f32 %v2058_v9, %v2027_v3  ;;  %2586 = vpow2.f32 %v2179_v11 }
0x139e   :  { %v2180_v15 = vmul.f32 -1.442695, %v2059_v13 }
0x13a0   :  { %2588 = vpow2.f32 %v2180_v15 }
0x13a9   :  { %v2587_v17 = vpop.eup %2586 }
0x13aa   :  { %v2036_v21 = vadd.f32 1.0, %v2587_v17 }
0x13ac   :  { %2590 = vrcp.f32 %v2036_v21 }
0x13ad   :  { %v2589_v22 = vpop.eup %2588 }
0x13ae   :  { %v2063_v23 = vadd.f32 1.0, %v2589_v22 }
0x13b0   :  { %2592 = vrcp.f32 %v2063_v23 }
0x13b9   :  { %v2591_v24 = vpop.eup %2590 }
0x13ba   :  { %v2050_v36 = vsub.f32 1.0, %v2591_v24  ;;  %v2056_v38 = vmul.f32 %v2591_v24, %v1845_v52 }
0x13bd   :  { %v2593_v27 = vpop.eup %2592 }
0x13be   :  { %v2077_v8 = vsub.f32 1.0, %v2593_v27  ;;  %v2083_v42 = vmul.f32 %v2593_v27, %v1873_v58 }
0x140a   :  { %v2041_v25 = vpop.permute.xlu0 %2040 }
0x140b   :  { %v2043_v26 = vmul.f32 %v2591_v24, %v2041_v25 }
0x140d   :  { %2045 = vrot.lane.b32.xlu0 %v2043_v26, %s2767_s23 }
0x140e   :  { %v2068_v28 = vpop.permute.xlu1 %2067 }
0x140f   :  { %v2070_v29 = vmul.f32 %v2593_v27, %v2068_v28 }
0x1411   :  { %2072 = vrot.lane.b32.xlu1 %v2070_v29, %s2767_s23 }
0x147f   :  { %v2046_v30 = vpop.permute.xlu0 %2045 }
0x1480   :  { %v2048_v31 = vadd.f32 %v2046_v30, %v2031_v5 }
0x1482   :  { %2594 = vtanh.f32 %v2048_v31 }
0x1483   :  { %v2073_v32 = vpop.permute.xlu1 %2072 }
0x1484   :  { %v2075_v33 = vadd.f32 %v2073_v32, %v2058_v9 }
0x1486   :  { %2596 = vtanh.f32 %v2075_v33 }
0x148f   :  { %v2595_v34 = vpop.eup %2594 }
0x1490   :  { %2052 = vrot.lane.b32.xlu0 %v2595_v34, %s2768_s24 }
0x1493   :  { %v2597_v35 = vpop.eup %2596 }
0x1494   :  { %2079 = vrot.lane.b32.xlu1 %v2597_v35, %s2768_s24 }
0x1502   :  { %v2053_v37 = vpop.permute.xlu0 %2052 }
0x1503   :  { %v2055_v39 = vmul.f32 %v2053_v37, %v2050_v36 }
0x1505   :  { %v2057_v40 = vadd.f32 %v2056_v38, %v2055_v39 }
0x1506   :  { %v2080_v41 = vpop.permute.xlu1 %2079 }
0x1507   :  { %v2082_v51 = vmul.f32 %v2080_v41, %v2077_v8  ;;  %2086 = vrot.lane.b32.xlu0 %v2057_v40, %s2768_s24 }
0x1509   :  { %v2084_v6 = vadd.f32 %v2083_v42, %v2082_v51 }
0x150b   :  { %2092 = vrot.lane.b32.xlu1 %v2084_v6, %s2768_s24 }
0x1579   :  { %v2087_v10 = vpop.permute.xlu0 %2086 }
0x157a   :  { %2090 = vst.msk [vmem:[#allocation13 + $0x38] sm:$0xff] %vm404_vm3, %v2087_v10 }
0x157b   :  { %2719 = shalt.err (!%p2716_p1)
}
0x157c   :  { %2107 = dma.vmem_to_hbm [thread:$0]  %s2102_s8, 1024, %s3257_s9, [#allocation6], %s2760_s18, %s2760_s18, %s2761_s19  }
0x157d   :  { %v2093_v12 = vpop.permute.xlu1 %2092  ;;  %s2728_s12 = scalar_lea.vmem %s2114_s29, 1024  ;;  %p2733_p3 = scmp.lt.s32.totalorder %s2114_s29, %s2114_s29 }
0x157e   :  { %2095 = vst.msk [vmem:[#allocation14] sm:$0xff] %vm404_vm3, %v2093_v12  ;;  %p2729_p2 = scmp.ne.s32.totalorder %s2114_s29, %s2728_s12  ;;  %p2734_p4 = scmp.lt.s32.totalorder %s2728_s12, %s2728_s12 }
0x1580   :  { %p2735_p5 = por %p2734_p4, %p2733_p3 }
0x1582   :  { %p2736_p6 = pnand %p2735_p5, %p2729_p2 }
0x1584   :  { %2739 = shalt.err (!%p2736_p6)
}
0x1585   :  { %2119 = dma.vmem_to_hbm [thread:$0]  %s2114_s29, 1024, %s3258_s10, [#allocation15], %s2760_s18, %s2760_s18, %s2761_s19  }
0x1586   :  { %2754 = dma.done.wait [#allocation6], 1024  }
0x1587   :  { %2755 = vsyncadd [#allocation6], 4294966272 }
0x1588   :  { %2756 = dma.done.wait [#allocation15], 1024  }
0x1589   :  { %2757 = vsyncadd [#allocation15], 4294966272 }
0x158a   :  { %2126 = vsyncpa [#allocation5], 1 }
0x158b   :  { %2127 = vsyncpa [#allocation8], 1 }
0x158c   :  { %2128 = vsyncpa [#allocation11], 1 }
0x158d   :  { %2129 = vsyncpa [#allocation6], 1 }
0x158e   :  { %2130 = vsyncpa [#allocation15], 1 }

</bundles_post_ra>
